<compile_context>
chip_gen: v7x
topology: tpu7x:2x2x1
jax: 0.10.0
libtpu: 0.0.40
codegen_flags: <defaults>
</compile_context>

<pallas_src>
import functools

import jax
import jax.numpy as jnp
import numpy as np
from jax.experimental import pallas as pl
from jax.experimental.pallas import tpu as pltpu

VOCAB_SIZE = 1000
EMBED_DIM = 256
HIDDEN_DIM = 512


def _round_up(x, m):
    return ((x + m - 1) // m) * m


def _encoder_kernel(ids_ref, table_ref, w1_ref, b1_ref, w2_ref, b2_ref,
                    w3_ref, b3_ref, out_ref):
    tb, seq_len = ids_ref.shape
    vocab_p = table_ref.shape[0]
    cdtype = table_ref.dtype  # bf16: MXU operand dtype for the counts matmul

    # ---- fused embedding gather + mean-pool --------------------------------
    # Per-row token counts (tb, vocab_p) built in bf16, then counts @ table on
    # the MXU.  The build processes a few batch rows at a time so the partial
    # counts stay vreg-resident across the whole (small, static) sequence and
    # the full buffer is written exactly once.
    ids = ids_ref[...]                                               # (tb, L)
    vocab_iota = jax.lax.broadcasted_iota(jnp.int32, (1, vocab_p), 1)

    rows = 16 if (tb % 16 == 0) else 8                               # sub-block rows
    parts = []
    for r in range(0, tb, rows):
        ids_r = ids[r:r + rows, :]                                   # (rows, L)
        c = (ids_r[:, 0:1] == vocab_iota).astype(cdtype)             # (rows, vocab)
        # NOTE: L is small (8) and static; if L ever grows, switch this to
        # lax.fori_loop(..., unroll=True) to bound live ranges.
        for l in range(1, seq_len):
            c = c + (ids_r[:, l:l + 1] == vocab_iota).astype(cdtype)
        parts.append(c)
    counts = parts[0] if len(parts) == 1 else jnp.concatenate(parts, axis=0)

    pooled = jnp.dot(counts, table_ref[...],
                     preferred_element_type=jnp.float32) * (1.0 / seq_len)  # (tb, E)

    # ---- 3-layer MLP: bf16 operands/activations, f32 accumulation ----------
    h1 = jnp.dot(pooled.astype(w1_ref.dtype), w1_ref[...],
                 preferred_element_type=jnp.float32) + b1_ref[...]
    h1 = jnp.maximum(h1, 0.0).astype(w2_ref.dtype)                   # bf16 activation

    h2 = jnp.dot(h1, w2_ref[...],
                 preferred_element_type=jnp.float32) + b2_ref[...]
    h2 = jnp.maximum(h2, 0.0).astype(w3_ref.dtype)                   # bf16 activation

    h3 = jnp.dot(h2, w3_ref[...],
                 preferred_element_type=jnp.float32) + b3_ref[...]
    out_ref[...] = h3.astype(out_ref.dtype)


def init_params(key, vocab_size=VOCAB_SIZE, embed_dim=EMBED_DIM,
                hidden_dim=HIDDEN_DIM, param_dtype=jnp.bfloat16):
    """Deterministic synthetic parameters.

    Weights are stored (in, out) (PyTorch Linear weights are (out, in); we use
    the transposed layout so the kernel computes row-major x @ W).  Matmul
    operands (embedding table, w1..w3) are stored in bf16; biases stay f32.
    The embedding table is zero-padded along vocab to a multiple of 128.
    """
    vocab_padded = _round_up(vocab_size, 128)
    k_emb, k1, k2, k3, kb1, kb2, kb3 = jax.random.split(key, 7)
    emb = jax.random.normal(k_emb, (vocab_size, embed_dim), jnp.float32) * 0.02
    emb = jnp.pad(emb, ((0, vocab_padded - vocab_size), (0, 0)))
    params = {
        "embedding": emb.astype(param_dtype),
        "w1": (jax.random.normal(k1, (embed_dim, hidden_dim), jnp.float32)
               * (1.0 / np.sqrt(embed_dim))).astype(param_dtype),
        "b1": jax.random.normal(kb1, (1, hidden_dim), jnp.float32) * 0.01,
        "w2": (jax.random.normal(k2, (hidden_dim, hidden_dim), jnp.float32)
               * (1.0 / np.sqrt(hidden_dim))).astype(param_dtype),
        "b2": jax.random.normal(kb2, (1, hidden_dim), jnp.float32) * 0.01,
        "w3": (jax.random.normal(k3, (hidden_dim, hidden_dim), jnp.float32)
               * (1.0 / np.sqrt(hidden_dim))).astype(param_dtype),
        "b3": jax.random.normal(kb3, (1, hidden_dim), jnp.float32) * 0.01,
    }
    return params


@functools.partial(jax.jit, static_argnames=("block_b",))
def simple_text_encoder(x_tokens, params, *, block_b=128):
    """x_tokens: (B, L) int32 token ids.  Returns (B, hidden_dim) float32."""
    B, L = x_tokens.shape
    table = params["embedding"]
    vocab_p, embed_dim = table.shape
    hidden_dim = params["w1"].shape[1]

    # Batch tile: multiple of 8 (sublane-dense), capped at block_b, and chosen
    # so the grid has >= 2 steps when B allows it (keeps both v7x TCs busy).
    half = _round_up(max(1, (B + 1) // 2), 8)
    tb = max(8, min(block_b, half))
    b_padded = _round_up(B, tb)
    if b_padded != B:
        x_tokens = jnp.pad(x_tokens, ((0, b_padded - B), (0, 0)))

    grid = (b_padded // tb,)
    const2 = lambda i: (0, 0)   # weights/table/biases: resident across grid steps

    # Advisory cost hint for XLA's scheduler around the custom call.
    flops = 2 * b_padded * (vocab_p * embed_dim + embed_dim * hidden_dim
                            + 2 * hidden_dim * hidden_dim)
    weight_bytes = sum(int(params[k].size) * params[k].dtype.itemsize
                       for k in ("w1", "w2", "w3", "b1", "b2", "b3"))
    bytes_accessed = (b_padded * L * 4
                      + int(table.size) * table.dtype.itemsize
                      + weight_bytes
                      + b_padded * hidden_dim * 4)

    out = pl.pallas_call(
        _encoder_kernel,
        out_shape=jax.ShapeDtypeStruct((b_padded, hidden_dim), jnp.float32),
        grid_spec=pltpu.PrefetchScalarGridSpec(
            num_scalar_prefetch=0,
            grid=grid,
            in_specs=[
                pl.BlockSpec((tb, L), lambda i: (i, 0)),         # token ids (batch-tiled)
                pl.BlockSpec((vocab_p, embed_dim), const2),      # embedding table
                pl.BlockSpec((embed_dim, hidden_dim), const2),   # w1
                pl.BlockSpec((1, hidden_dim), const2),           # b1
                pl.BlockSpec((hidden_dim, hidden_dim), const2),  # w2
                pl.BlockSpec((1, hidden_dim), const2),           # b2
                pl.BlockSpec((hidden_dim, hidden_dim), const2),  # w3
                pl.BlockSpec((1, hidden_dim), const2),           # b3
            ],
            out_specs=pl.BlockSpec((tb, hidden_dim), lambda i: (i, 0)),
        ),
        compiler_params=pltpu.CompilerParams(
            dimension_semantics=("parallel",),
            # Resident footprint (table + weights + tiles + counts) is a few
            # MiB, far under even v7x's 64 MiB physical VMEM.
            vmem_limit_bytes=32 * 1024 * 1024,
        ),
        cost_estimate=pl.CostEstimate(flops=int(flops), transcendentals=0,
                                      bytes_accessed=int(bytes_accessed)),
    )(x_tokens, table, params["w1"], params["b1"], params["w2"],
      params["b2"], params["w3"], params["b3"])

    return out[:B]


def _reference(x_tokens, params):
    """Pure-JAX reference (same bf16 weights, f32 compute)."""
    table = params["embedding"].astype(jnp.float32)
    w1 = params["w1"].astype(jnp.float32)
    w2 = params["w2"].astype(jnp.float32)
    w3 = params["w3"].astype(jnp.float32)
    embedded = jnp.take(table, x_tokens, axis=0)
    pooled = embedded.mean(axis=1)
    h1 = jnp.maximum(pooled @ w1 + params["b1"], 0.0)
    h2 = jnp.maximum(h1 @ w2 + params["b2"], 0.0)
    return h2 @ w3 + params["b3"]


if __name__ == "__main__":
    key = jax.random.PRNGKey(0)
    k_params, k_tokens = jax.random.split(key)

    params = init_params(k_params)

    B, L = 2, 8
    x = jax.random.randint(k_tokens, (B, L), 0, VOCAB_SIZE, dtype=jnp.int32)

    out = jax.block_until_ready(simple_text_encoder(x, params))
    ref = jax.block_until_ready(_reference(x, params))

    np.testing.assert_allclose(np.asarray(out), np.asarray(ref),
                               rtol=3e-2, atol=3e-3)
    print("KERNEL_OK")
</pallas_src>

<mosaic_0001>
module attributes {stable_mosaic.version = 11 : i64} {
  func.func @_encoder_kernel(%arg0: i32, %arg1: memref<8x8xi32, #tpu.memory_space<vmem>>, %arg2: memref<1024x256xbf16, #tpu.memory_space<vmem>>, %arg3: memref<256x512xbf16, #tpu.memory_space<vmem>>, %arg4: memref<1x512xf32, #tpu.memory_space<vmem>>, %arg5: memref<512x512xbf16, #tpu.memory_space<vmem>>, %arg6: memref<1x512xf32, #tpu.memory_space<vmem>>, %arg7: memref<512x512xbf16, #tpu.memory_space<vmem>>, %arg8: memref<1x512xf32, #tpu.memory_space<vmem>>, %arg9: memref<8x512xf32, #tpu.memory_space<vmem>>) attributes {dimension_semantics = [#tpu.dimension_semantics<parallel>], iteration_bounds = array<i64: 1>, scalar_prefetch = 0 : i64, scratch_operands = 0 : i64, tpu.core_type = #tpu.core_type<tc>, window_params = [{transform_indices = @transform_0, window_bounds = array<i64: 8, 8>}, {pipeline_mode = #tpu.pipeline_mode<synchronous>, transform_indices = @transform_1, window_bounds = array<i64: 1024, 256>}, {pipeline_mode = #tpu.pipeline_mode<synchronous>, transform_indices = @transform_2, window_bounds = array<i64: 256, 512>}, {pipeline_mode = #tpu.pipeline_mode<synchronous>, transform_indices = @transform_3, window_bounds = array<i64: 1, 512>}, {pipeline_mode = #tpu.pipeline_mode<synchronous>, transform_indices = @transform_4, window_bounds = array<i64: 512, 512>}, {pipeline_mode = #tpu.pipeline_mode<synchronous>, transform_indices = @transform_5, window_bounds = array<i64: 1, 512>}, {pipeline_mode = #tpu.pipeline_mode<synchronous>, transform_indices = @transform_6, window_bounds = array<i64: 512, 512>}, {pipeline_mode = #tpu.pipeline_mode<synchronous>, transform_indices = @transform_7, window_bounds = array<i64: 1, 512>}, {transform_indices = @transform_8, window_bounds = array<i64: 8, 512>}]} {
    %c0 = arith.constant 0 : index
    %c0_0 = arith.constant 0 : index
    %0 = vector.load %arg1[%c0, %c0_0] : memref<8x8xi32, #tpu.memory_space<vmem>>, vector<8x8xi32>
    %1 = tpu.iota {dimensions = array<i32: 1>} : vector<1x1024xi32>
    %2 = vector.extract_strided_slice %0 {offsets = [0, 0], sizes = [8, 1], strides = [1, 1]} : vector<8x8xi32> to vector<8x1xi32>
    %3 = vector.broadcast %2 : vector<8x1xi32> to vector<8x1024xi32>
    %4 = vector.broadcast %1 : vector<1x1024xi32> to vector<8x1024xi32>
    %5 = arith.cmpi eq, %3, %4 : vector<8x1024xi32>
    %6 = arith.extui %5 : vector<8x1024xi1> to vector<8x1024xi32>
    %7 = arith.sitofp %6 : vector<8x1024xi32> to vector<8x1024xf32>
    %8 = arith.truncf %7 : vector<8x1024xf32> to vector<8x1024xbf16>
    %9 = vector.extract_strided_slice %0 {offsets = [0, 1], sizes = [8, 1], strides = [1, 1]} : vector<8x8xi32> to vector<8x1xi32>
    %10 = vector.broadcast %9 : vector<8x1xi32> to vector<8x1024xi32>
    %11 = vector.broadcast %1 : vector<1x1024xi32> to vector<8x1024xi32>
    %12 = arith.cmpi eq, %10, %11 : vector<8x1024xi32>
    %13 = arith.extui %12 : vector<8x1024xi1> to vector<8x1024xi32>
    %14 = arith.sitofp %13 : vector<8x1024xi32> to vector<8x1024xf32>
    %15 = arith.truncf %14 : vector<8x1024xf32> to vector<8x1024xbf16>
    %16 = arith.addf %8, %15 : vector<8x1024xbf16>
    %17 = vector.extract_strided_slice %0 {offsets = [0, 2], sizes = [8, 1], strides = [1, 1]} : vector<8x8xi32> to vector<8x1xi32>
    %18 = vector.broadcast %17 : vector<8x1xi32> to vector<8x1024xi32>
    %19 = vector.broadcast %1 : vector<1x1024xi32> to vector<8x1024xi32>
    %20 = arith.cmpi eq, %18, %19 : vector<8x1024xi32>
    %21 = arith.extui %20 : vector<8x1024xi1> to vector<8x1024xi32>
    %22 = arith.sitofp %21 : vector<8x1024xi32> to vector<8x1024xf32>
    %23 = arith.truncf %22 : vector<8x1024xf32> to vector<8x1024xbf16>
    %24 = arith.addf %16, %23 : vector<8x1024xbf16>
    %25 = vector.extract_strided_slice %0 {offsets = [0, 3], sizes = [8, 1], strides = [1, 1]} : vector<8x8xi32> to vector<8x1xi32>
    %26 = vector.broadcast %25 : vector<8x1xi32> to vector<8x1024xi32>
    %27 = vector.broadcast %1 : vector<1x1024xi32> to vector<8x1024xi32>
    %28 = arith.cmpi eq, %26, %27 : vector<8x1024xi32>
    %29 = arith.extui %28 : vector<8x1024xi1> to vector<8x1024xi32>
    %30 = arith.sitofp %29 : vector<8x1024xi32> to vector<8x1024xf32>
    %31 = arith.truncf %30 : vector<8x1024xf32> to vector<8x1024xbf16>
    %32 = arith.addf %24, %31 : vector<8x1024xbf16>
    %33 = vector.extract_strided_slice %0 {offsets = [0, 4], sizes = [8, 1], strides = [1, 1]} : vector<8x8xi32> to vector<8x1xi32>
    %34 = vector.broadcast %33 : vector<8x1xi32> to vector<8x1024xi32>
    %35 = vector.broadcast %1 : vector<1x1024xi32> to vector<8x1024xi32>
    %36 = arith.cmpi eq, %34, %35 : vector<8x1024xi32>
    %37 = arith.extui %36 : vector<8x1024xi1> to vector<8x1024xi32>
    %38 = arith.sitofp %37 : vector<8x1024xi32> to vector<8x1024xf32>
    %39 = arith.truncf %38 : vector<8x1024xf32> to vector<8x1024xbf16>
    %40 = arith.addf %32, %39 : vector<8x1024xbf16>
    %41 = vector.extract_strided_slice %0 {offsets = [0, 5], sizes = [8, 1], strides = [1, 1]} : vector<8x8xi32> to vector<8x1xi32>
    %42 = vector.broadcast %41 : vector<8x1xi32> to vector<8x1024xi32>
    %43 = vector.broadcast %1 : vector<1x1024xi32> to vector<8x1024xi32>
    %44 = arith.cmpi eq, %42, %43 : vector<8x1024xi32>
    %45 = arith.extui %44 : vector<8x1024xi1> to vector<8x1024xi32>
    %46 = arith.sitofp %45 : vector<8x1024xi32> to vector<8x1024xf32>
    %47 = arith.truncf %46 : vector<8x1024xf32> to vector<8x1024xbf16>
    %48 = arith.addf %40, %47 : vector<8x1024xbf16>
    %49 = vector.extract_strided_slice %0 {offsets = [0, 6], sizes = [8, 1], strides = [1, 1]} : vector<8x8xi32> to vector<8x1xi32>
    %50 = vector.broadcast %49 : vector<8x1xi32> to vector<8x1024xi32>
    %51 = vector.broadcast %1 : vector<1x1024xi32> to vector<8x1024xi32>
    %52 = arith.cmpi eq, %50, %51 : vector<8x1024xi32>
    %53 = arith.extui %52 : vector<8x1024xi1> to vector<8x1024xi32>
    %54 = arith.sitofp %53 : vector<8x1024xi32> to vector<8x1024xf32>
    %55 = arith.truncf %54 : vector<8x1024xf32> to vector<8x1024xbf16>
    %56 = arith.addf %48, %55 : vector<8x1024xbf16>
    %57 = vector.extract_strided_slice %0 {offsets = [0, 7], sizes = [8, 1], strides = [1, 1]} : vector<8x8xi32> to vector<8x1xi32>
    %58 = vector.broadcast %57 : vector<8x1xi32> to vector<8x1024xi32>
    %59 = vector.broadcast %1 : vector<1x1024xi32> to vector<8x1024xi32>
    %60 = arith.cmpi eq, %58, %59 : vector<8x1024xi32>
    %61 = arith.extui %60 : vector<8x1024xi1> to vector<8x1024xi32>
    %62 = arith.sitofp %61 : vector<8x1024xi32> to vector<8x1024xf32>
    %63 = arith.truncf %62 : vector<8x1024xf32> to vector<8x1024xbf16>
    %64 = arith.addf %56, %63 : vector<8x1024xbf16>
    %c0_1 = arith.constant 0 : index
    %c0_2 = arith.constant 0 : index
    %65 = vector.load %arg2[%c0_1, %c0_2] : memref<1024x256xbf16, #tpu.memory_space<vmem>>, vector<1024x256xbf16>
    %cst = arith.constant dense<0.000000e+00> : vector<8x256xf32>
    %66 = tpu.matmul %64, %65, %cst {dimension_numbers = #tpu.dot_dimension_numbers<[1], [0], [0], [1], [0, 0, 1, 1], [], []>} : vector<8x1024xbf16>, vector<1024x256xbf16>, vector<8x256xf32> -> vector<8x256xf32>
    %cst_3 = arith.constant 1.250000e-01 : f32
    %67 = vector.broadcast %cst_3 : f32 to vector<8x256xf32>
    %68 = arith.mulf %66, %67 : vector<8x256xf32>
    %69 = arith.truncf %68 : vector<8x256xf32> to vector<8x256xbf16>
    %c0_4 = arith.constant 0 : index
    %c0_5 = arith.constant 0 : index
    %70 = vector.load %arg3[%c0_4, %c0_5] : memref<256x512xbf16, #tpu.memory_space<vmem>>, vector<256x512xbf16>
    %cst_6 = arith.constant dense<0.000000e+00> : vector<8x512xf32>
    %71 = tpu.matmul %69, %70, %cst_6 {dimension_numbers = #tpu.dot_dimension_numbers<[1], [0], [0], [1], [0, 0, 1, 1], [], []>} : vector<8x256xbf16>, vector<256x512xbf16>, vector<8x512xf32> -> vector<8x512xf32>
    %c0_7 = arith.constant 0 : index
    %c0_8 = arith.constant 0 : index
    %72 = vector.load %arg4[%c0_7, %c0_8] : memref<1x512xf32, #tpu.memory_space<vmem>>, vector<1x512xf32>
    %73 = vector.broadcast %72 : vector<1x512xf32> to vector<8x512xf32>
    %74 = arith.addf %71, %73 : vector<8x512xf32>
    %cst_9 = arith.constant 0.000000e+00 : f32
    %75 = vector.broadcast %cst_9 : f32 to vector<8x512xf32>
    %76 = arith.maximumf %74, %75 : vector<8x512xf32>
    %77 = arith.truncf %76 : vector<8x512xf32> to vector<8x512xbf16>
    %c0_10 = arith.constant 0 : index
    %c0_11 = arith.constant 0 : index
    %78 = vector.load %arg5[%c0_10, %c0_11] : memref<512x512xbf16, #tpu.memory_space<vmem>>, vector<512x512xbf16>
    %cst_12 = arith.constant dense<0.000000e+00> : vector<8x512xf32>
    %79 = tpu.matmul %77, %78, %cst_12 {dimension_numbers = #tpu.dot_dimension_numbers<[1], [0], [0], [1], [0, 0, 1, 1], [], []>} : vector<8x512xbf16>, vector<512x512xbf16>, vector<8x512xf32> -> vector<8x512xf32>
    %c0_13 = arith.constant 0 : index
    %c0_14 = arith.constant 0 : index
    %80 = vector.load %arg6[%c0_13, %c0_14] : memref<1x512xf32, #tpu.memory_space<vmem>>, vector<1x512xf32>
    %81 = vector.broadcast %80 : vector<1x512xf32> to vector<8x512xf32>
    %82 = arith.addf %79, %81 : vector<8x512xf32>
    %cst_15 = arith.constant 0.000000e+00 : f32
    %83 = vector.broadcast %cst_15 : f32 to vector<8x512xf32>
    %84 = arith.maximumf %82, %83 : vector<8x512xf32>
    %85 = arith.truncf %84 : vector<8x512xf32> to vector<8x512xbf16>
    %c0_16 = arith.constant 0 : index
    %c0_17 = arith.constant 0 : index
    %86 = vector.load %arg7[%c0_16, %c0_17] : memref<512x512xbf16, #tpu.memory_space<vmem>>, vector<512x512xbf16>
    %cst_18 = arith.constant dense<0.000000e+00> : vector<8x512xf32>
    %87 = tpu.matmul %85, %86, %cst_18 {dimension_numbers = #tpu.dot_dimension_numbers<[1], [0], [0], [1], [0, 0, 1, 1], [], []>} : vector<8x512xbf16>, vector<512x512xbf16>, vector<8x512xf32> -> vector<8x512xf32>
    %c0_19 = arith.constant 0 : index
    %c0_20 = arith.constant 0 : index
    %88 = vector.load %arg8[%c0_19, %c0_20] : memref<1x512xf32, #tpu.memory_space<vmem>>, vector<1x512xf32>
    %89 = vector.broadcast %88 : vector<1x512xf32> to vector<8x512xf32>
    %90 = arith.addf %87, %89 : vector<8x512xf32>
    %c0_21 = arith.constant 0 : index
    %c0_22 = arith.constant 0 : index
    %91 = vector.load %arg9[%c0_21, %c0_22] : memref<8x512xf32, #tpu.memory_space<vmem>>, vector<8x512xf32>
    tpu.vector_store %arg9[%c0_21, %c0_22], %90 {strides = array<i32>} : memref<8x512xf32, #tpu.memory_space<vmem>>, vector<8x512xf32>,
    return
  }
  func.func @transform_0(%arg0: i32) -> (i32, i32) {
    %c0_i32 = arith.constant 0 : i32
    %c0_i32_0 = arith.constant 0 : i32
    return %arg0, %c0_i32 : i32, i32
  }
  func.func @transform_1(%arg0: i32) -> (i32, i32) {
    %c0_i32 = arith.constant 0 : i32
    %c0_i32_0 = arith.constant 0 : i32
    %c0_i32_1 = arith.constant 0 : i32
    return %c0_i32, %c0_i32_0 : i32, i32
  }
  func.func @transform_2(%arg0: i32) -> (i32, i32) {
    %c0_i32 = arith.constant 0 : i32
    %c0_i32_0 = arith.constant 0 : i32
    %c0_i32_1 = arith.constant 0 : i32
    return %c0_i32, %c0_i32_0 : i32, i32
  }
  func.func @transform_3(%arg0: i32) -> (i32, i32) {
    %c0_i32 = arith.constant 0 : i32
    %c0_i32_0 = arith.constant 0 : i32
    %c0_i32_1 = arith.constant 0 : i32
    return %c0_i32, %c0_i32_0 : i32, i32
  }
  func.func @transform_4(%arg0: i32) -> (i32, i32) {
    %c0_i32 = arith.constant 0 : i32
    %c0_i32_0 = arith.constant 0 : i32
    %c0_i32_1 = arith.constant 0 : i32
    return %c0_i32, %c0_i32_0 : i32, i32
  }
  func.func @transform_5(%arg0: i32) -> (i32, i32) {
    %c0_i32 = arith.constant 0 : i32
    %c0_i32_0 = arith.constant 0 : i32
    %c0_i32_1 = arith.constant 0 : i32
    return %c0_i32, %c0_i32_0 : i32, i32
  }
  func.func @transform_6(%arg0: i32) -> (i32, i32) {
    %c0_i32 = arith.constant 0 : i32
    %c0_i32_0 = arith.constant 0 : i32
    %c0_i32_1 = arith.constant 0 : i32
    return %c0_i32, %c0_i32_0 : i32, i32
  }
  func.func @transform_7(%arg0: i32) -> (i32, i32) {
    %c0_i32 = arith.constant 0 : i32
    %c0_i32_0 = arith.constant 0 : i32
    %c0_i32_1 = arith.constant 0 : i32
    return %c0_i32, %c0_i32_0 : i32, i32
  }
  func.func @transform_8(%arg0: i32) -> (i32, i32) {
    %c0_i32 = arith.constant 0 : i32
    %c0_i32_0 = arith.constant 0 : i32
    return %arg0, %c0_i32 : i32, i32
  }
}

</mosaic_0001>

<bundles_post_ra>
// kernel: simple_text_encoder.1
= control target key start
LH: loop header
LB: loop body
LE: loop exit
PB: predicated region body
PF: predicated region fallthrough
CT: control target
= control target key end

     0   :  { %13 = vsyncpa [#allocation3], 0  ;;  %s5607_s0 = inlined_call_operand.vmem [shape: s32[8,8], index: 0, kind: input, shape index: {}]   ;;  %s5608_s1 = inlined_call_operand.hbm [shape: bf16[1024,256], index: 1, kind: input, shape index: {}]   ;;  %s5609_s2 = inlined_call_operand.hbm [shape: bf16[256,512], index: 2, kind: input, shape index: {}]   ;;  %s5610_s3 = inlined_call_operand.vmem [shape: f32[1,512], index: 3, kind: input, shape index: {}]   ;;  %s5611_s4 = inlined_call_operand.hbm [shape: bf16[512,512], index: 4, kind: input, shape index: {}]   ;;  %s5612_s5 = inlined_call_operand.vmem [shape: f32[1,512], index: 5, kind: input, shape index: {}]   ;;  %s5613_s6 = inlined_call_operand.hbm [shape: bf16[512,512], index: 6, kind: input, shape index: {}]   ;;  %s5614_s7 = inlined_call_operand.vmem [shape: f32[1,512], index: 7, kind: input, shape index: {}]   ;;  %s5615_s8 = inlined_call_operand.vmem [shape: f32[8,512], index: 8, kind: output, shape index: {}]  }
   0x1   :  { %14 = vsyncpa [#allocation5], 0 }
   0x2   :  { %15 = vsyncpa [#allocation8], 0  ;;  %s5127_s27 = smov [#allocation4]   ;;  %s5033_s9 = scalar_lea.hbm %s5609_s2, 8192 }
   0x3   :  { %s35_s28 = sshll.u32 %s5127_s27, 4  ;;  %p5034_p0 = scmp.ne.s32.totalorder %s5609_s2, %s5033_s9  ;;  %s36_s28 = int_to_ptr.vmem [resolvable:$true] %s35_s28 }
   0x4   :  { %p5037_p1 = scmp.lt.u32.totalorder %s5033_s9, %s5609_s2 }
   0x6   :  { %p5039_p2 = pnand %p5037_p1, %p5034_p0 }
   0x8   :  { %5042 = shalt.err (!%p5039_p2)
}
   0x9   :  { %s5043_s14 = scalar_lea.vmem %s36_s28, 8192  ;;  %p5048_p4 = scmp.lt.s32.totalorder %s36_s28, %s36_s28 }
   0xa   :  { %p5044_p3 = scmp.ne.s32.totalorder %s36_s28, %s5043_s14  ;;  %p5049_p5 = scmp.lt.s32.totalorder %s5043_s14, %s5043_s14 }
   0xc   :  { %p5050_p6 = por %p5049_p5, %p5048_p4 }
   0xe   :  { %p5051_p7 = pnand %p5050_p6, %p5044_p3 }
  0x10   :  { %5054 = shalt.err (!%p5051_p7)
}
  0x11   :  { %s5128_s15 = smov 256   ;;  %s5129_s16 = smov 16  }
  0x12   :  { %41 = dma.hbm_to_vmem [thread:$0]  %s5609_s2, 8192, %s36_s28, [#allocation5], %s5128_s15, %s5128_s15, %s5129_s16  }
  0x13   :  { %s5130_s19 = smov [#allocation2]   ;;  %s5055_s23 = scalar_lea.hbm %s5608_s1, 16384 }
  0x14   :  { %s23_s20 = sshll.u32 %s5130_s19, 4  ;;  %p5056_p8 = scmp.ne.s32.totalorder %s5608_s1, %s5055_s23  ;;  %s24_s20 = int_to_ptr.vmem [resolvable:$true] %s23_s20 }
  0x15   :  { %p5059_p9 = scmp.lt.u32.totalorder %s5055_s23, %s5608_s1 }
  0x17   :  { %p5061_p10 = pnand %p5059_p9, %p5056_p8 }
  0x19   :  { %5064 = shalt.err (!%p5061_p10)
}
  0x1a   :  { %s5065_s29 = scalar_lea.vmem %s24_s20, 16384  ;;  %p5070_p12 = scmp.lt.s32.totalorder %s24_s20, %s24_s20 }
  0x1b   :  { %p5066_p11 = scmp.ne.s32.totalorder %s24_s20, %s5065_s29  ;;  %p5071_p13 = scmp.lt.s32.totalorder %s5065_s29, %s5065_s29 }
  0x1d   :  { %p5072_p0 = por %p5071_p13, %p5070_p12 }
  0x1f   :  { %p5073_p1 = pnand %p5072_p0, %p5066_p11 }
  0x21   :  { %5076 = shalt.err (!%p5073_p1)
}
  0x22   :  { %s5131_s2 = smov 128   ;;  %s5132_s28 = smov 8  }
  0x23   :  { %29 = dma.hbm_to_vmem [thread:$0]  %s5608_s1, 16384, %s24_s20, [#allocation3], %s5131_s2, %s5131_s2, %s5132_s28  }
  0x24   :  { %s5133_s10 = smov [#allocation6]   ;;  %s5134_s12 = smov [#allocation7]  }
  0x25   :  { %s49_s11 = sshll.u32 %s5133_s10, 4  ;;  %s63_s13 = sshll.u32 %s5134_s12, 4  ;;  %s50_s11 = int_to_ptr.vmem [resolvable:$true] %s49_s11  ;;  %s5216_s13 = int_to_ptr.vmem [resolvable:$true] %s63_s13 }
  0x26   :  { %s5077_s18 = scalar_lea.hbm %s5611_s4, 16384 }
  0x27   :  { %p5078_p2 = scmp.ne.s32.totalorder %s5611_s4, %s5077_s18  ;;  %p5081_p3 = scmp.lt.u32.totalorder %s5077_s18, %s5611_s4 }
  0x29   :  { %p5083_p4 = pnand %p5081_p3, %p5078_p2 }
  0x2b   :  { %5086 = shalt.err (!%p5083_p4)
}
  0x2c   :  { %s5087_s1 = scalar_lea.vmem %s50_s11, 16384  ;;  %p5092_p6 = scmp.lt.s32.totalorder %s50_s11, %s50_s11 }
  0x2d   :  { %p5088_p5 = scmp.ne.s32.totalorder %s50_s11, %s5087_s1  ;;  %p5093_p7 = scmp.lt.s32.totalorder %s5087_s1, %s5087_s1 }
  0x2f   :  { %p5094_p8 = por %p5093_p7, %p5092_p6 }
  0x31   :  { %p5095_p9 = pnand %p5094_p8, %p5088_p5 }
  0x33   :  { %5098 = shalt.err (!%p5095_p9)
}
  0x34   :  { %55 = dma.hbm_to_vmem [thread:$0]  %s5611_s4, 16384, %s50_s11, [#allocation5], %s5128_s15, %s5128_s15, %s5129_s16  }
  0x35   :  { %s5099_s27 = scalar_lea.hbm %s5613_s6, 16384 }
  0x36   :  { %p5100_p10 = scmp.ne.s32.totalorder %s5613_s6, %s5099_s27  ;;  %p5103_p11 = scmp.lt.u32.totalorder %s5099_s27, %s5613_s6 }
  0x38   :  { %p5105_p12 = pnand %p5103_p11, %p5100_p10 }
  0x3a   :  { %5108 = shalt.err (!%p5105_p12)
}
  0x3b   :  { %s5109_s9 = scalar_lea.vmem %s5216_s13, 16384  ;;  %p5114_p0 = scmp.lt.s32.totalorder %s5216_s13, %s5216_s13 }
  0x3c   :  { %p5110_p13 = scmp.ne.s32.totalorder %s5216_s13, %s5109_s9  ;;  %p5115_p1 = scmp.lt.s32.totalorder %s5109_s9, %s5109_s9 }
  0x3e   :  { %p5116_p2 = por %p5115_p1, %p5114_p0 }
  0x40   :  { %p5117_p3 = pnand %p5116_p2, %p5110_p13 }
  0x42   :  { %5120 = shalt.err (!%p5117_p3)
}
  0x43   :  { %69 = dma.hbm_to_vmem [thread:$0]  %s5613_s6, 16384, %s5216_s13, [#allocation8], %s5128_s15, %s5128_s15, %s5129_s16  }
  0x44   :  { %5121 = dma.done.wait [#allocation3], 16384  }
  0x45   :  { %5122 = vsyncadd [#allocation3], 4294950912 }
  0x46   :  { %5123 = dma.done.wait [#allocation5], 24576  }
  0x47   :  { %5124 = vsyncadd [#allocation5], 4294942720 }
  0x48   :  { %5125 = dma.done.wait [#allocation8], 16384  }
  0x49   :  { %5126 = vsyncadd [#allocation8], 4294950912  ;;  %v5135_v0 = vmov 2   ;;  %v5136_v1 = vmov 0   ;;  %v84_v2 = vld [vmem:[%s5607_s0] sm:$0xff]  ;;  %v5137_v9 = vmov 3  }
  0x4a   :  { %4354 = vset.pattern.permute.xlu1 %v5135_v0  ;;  %4352 = vset.pattern.permute.xlu0 %v5136_v1  ;;  %v4361_v3 = vld [vmem:[#allocation2 + $0x104] ss:$8 sps:$4 sm:$0xff]   ;;  %v4365_v5 = vld [vmem:[#allocation2 + $0x100] ss:$8 sps:$4 sm:$0xff]   ;;  %v4367_v7 = vld [vmem:[#allocation2 + $0x114] ss:$8 sps:$4 sm:$0xff]  }
  0x4b   :  { %173 = vperm.xlu1 %4354, %v84_v2   ;;  %95 = vperm.xlu0 %4352, %v84_v2   ;;  %v4363_v4 = vld [vmem:[#allocation2 + $0x4] ss:$8 sps:$4 sm:$0xff]   ;;  %v4366_v6 = vld [vmem:[#allocation2] ss:$8 sps:$4 sm:$0xff]   ;;  %v4369_v8 = vld [vmem:[#allocation2 + $0x14] ss:$8 sps:$4 sm:$0xff]  }
  0x4c   :  { %1239 = vmatprep.subr.bf16.mxu0 %v4361_v3  ;;  %1198 = vmatprep.subr.bf16.mxu1 %v4363_v4  ;;  %v5138_v10 = vmov 1   ;;  %v4371_v11 = vld [vmem:[#allocation2 + $0x110] ss:$8 sps:$4 sm:$0xff]   ;;  %v4373_v12 = vld [vmem:[#allocation2 + $0x124] ss:$8 sps:$4 sm:$0xff]   ;;  %v5139_v17 = vmov 4  }
  0x4d   :  { %1240 = vmatpush1.bf16.msra.mxu0 %v4365_v5  ;;  %1199 = vmatpush1.bf16.msra.mxu1 %v4366_v6  ;;  %v4372_v13 = vld [vmem:[#allocation2 + $0x10] ss:$8 sps:$4 sm:$0xff]   ;;  %v4375_v14 = vld [vmem:[#allocation2 + $0x24] ss:$8 sps:$4 sm:$0xff]   ;;  %v4377_v15 = vld [vmem:[#allocation2 + $0x120] ss:$8 sps:$4 sm:$0xff]  }
  0x4e   :  { %1241 = vmatprep.subr.bf16.mxu0 %v4367_v7  ;;  %1200 = vmatprep.subr.bf16.mxu1 %v4369_v8  ;;  %v4379_v16 = vld [vmem:[#allocation2 + $0x134] ss:$8 sps:$4 sm:$0xff]   ;;  %v5140_v18 = vmov 5   ;;  %v4378_v19 = vld [vmem:[#allocation2 + $0x20] ss:$8 sps:$4 sm:$0xff]   ;;  %v5141_v23 = vmov 6  }
  0x4f   :  { %4355 = vset.pattern.permute.xlu1 %v5137_v9  ;;  %4353 = vset.pattern.permute.xlu0 %v5138_v10  ;;  %v4381_v20 = vld [vmem:[#allocation2 + $0x34] ss:$8 sps:$4 sm:$0xff]   ;;  %v4383_v21 = vld [vmem:[#allocation2 + $0x130] ss:$8 sps:$4 sm:$0xff]   ;;  %v4385_v22 = vld [vmem:[#allocation2 + $0x144] ss:$8 sps:$4 sm:$0xff]   ;;  %v85_v10 = vlaneseq }
  0x50   :  { %216 = vperm.xlu1 %4355, %v84_v2   ;;  %130 = vperm.xlu0 %4353, %v84_v2   ;;  %v5142_v24 = vmov 7   ;;  %v4384_v25 = vld [vmem:[#allocation2 + $0x30] ss:$8 sps:$4 sm:$0xff]   ;;  %v4387_v26 = vld [vmem:[#allocation2 + $0x44] ss:$8 sps:$4 sm:$0xff]  }
  0x51   :  { %1242 = vmatpush1.bf16.msra.mxu0 %v4371_v11  ;;  %1201 = vmatpush1.bf16.msra.mxu1 %v4372_v13  ;;  %v4389_v27 = vld [vmem:[#allocation2 + $0x140] ss:$8 sps:$4 sm:$0xff]   ;;  %v4391_v28 = vld [vmem:[#allocation2 + $0x154] ss:$8 sps:$4 sm:$0xff]   ;;  %v4395_v31 = vld [vmem:[#allocation2 + $0x150] ss:$8 sps:$4 sm:$0xff]  }
  0x52   :  { %1243 = vmatprep.subr.bf16.mxu0 %v4373_v12  ;;  %1202 = vmatprep.subr.bf16.mxu1 %v4375_v14  ;;  %v4390_v29 = vld [vmem:[#allocation2 + $0x40] ss:$8 sps:$4 sm:$0xff]   ;;  %v4393_v30 = vld [vmem:[#allocation2 + $0x54] ss:$8 sps:$4 sm:$0xff]   ;;  %v4397_v32 = vld [vmem:[#allocation2 + $0x164] ss:$8 sps:$4 sm:$0xff]  }
  0x53   :  { %v4396_v33 = vld [vmem:[#allocation2 + $0x50] ss:$8 sps:$4 sm:$0xff]   ;;  %v4399_v34 = vld [vmem:[#allocation2 + $0x64] ss:$8 sps:$4 sm:$0xff]   ;;  %v4401_v35 = vld [vmem:[#allocation2 + $0x160] ss:$8 sps:$4 sm:$0xff]  }
  0x54   :  { %4356 = vset.pattern.permute.xlu1 %v5139_v17  ;;  %4357 = vset.pattern.permute.xlu0 %v5140_v18  ;;  %v4403_v36 = vld [vmem:[#allocation2 + $0x174] ss:$8 sps:$4 sm:$0xff]   ;;  %v4402_v37 = vld [vmem:[#allocation2 + $0x60] ss:$8 sps:$4 sm:$0xff]   ;;  %v4407_v39 = vld [vmem:[#allocation2 + $0x170] ss:$8 sps:$4 sm:$0xff]  }
  0x55   :  { %259 = vperm.xlu1 %4356, %v84_v2   ;;  %302 = vperm.xlu0 %4357, %v84_v2   ;;  %v4405_v38 = vld [vmem:[#allocation2 + $0x74] ss:$8 sps:$4 sm:$0xff]   ;;  %v4409_v40 = vld [vmem:[#allocation2 + $0x184] ss:$8 sps:$4 sm:$0xff]   ;;  %v4408_v41 = vld [vmem:[#allocation2 + $0x70] ss:$8 sps:$4 sm:$0xff]  }
  0x56   :  { %1244 = vmatpush1.bf16.msra.mxu0 %v4377_v15  ;;  %1203 = vmatpush1.bf16.msra.mxu1 %v4378_v19  ;;  %v4411_v42 = vld [vmem:[#allocation2 + $0x84] ss:$8 sps:$4 sm:$0xff]   ;;  %v4413_v43 = vld [vmem:[#allocation2 + $0x180] ss:$8 sps:$4 sm:$0xff]   ;;  %v4415_v44 = vld [vmem:[#allocation2 + $0x194] ss:$8 sps:$4 sm:$0xff]  }
  0x57   :  { %1245 = vmatprep.subr.bf16.mxu0 %v4379_v16  ;;  %1204 = vmatprep.subr.bf16.mxu1 %v4381_v20  ;;  %v4414_v45 = vld [vmem:[#allocation2 + $0x80] ss:$8 sps:$4 sm:$0xff]   ;;  %v4417_v46 = vld [vmem:[#allocation2 + $0x94] ss:$8 sps:$4 sm:$0xff]   ;;  %v4419_v47 = vld [vmem:[#allocation2 + $0x190] ss:$8 sps:$4 sm:$0xff]  }
  0x58   :  { %v4421_v48 = vld [vmem:[#allocation2 + $0x1a4] ss:$8 sps:$4 sm:$0xff]   ;;  %v4420_v49 = vld [vmem:[#allocation2 + $0x90] ss:$8 sps:$4 sm:$0xff]   ;;  %v4425_v51 = vld [vmem:[#allocation2 + $0x1a0] ss:$8 sps:$4 sm:$0xff]  }
  0x59   :  { %4358 = vset.pattern.permute.xlu1 %v5141_v23  ;;  %4360 = vset.pattern.permute.xlu0 %v5142_v24  ;;  %v4423_v50 = vld [vmem:[#allocation2 + $0xa4] ss:$8 sps:$4 sm:$0xff]   ;;  %v4426_v52 = vld [vmem:[#allocation2 + $0xa0] ss:$8 sps:$4 sm:$0xff]   ;;  %v4427_v53 = vld [vmem:[#allocation2 + $0x1b4] ss:$8 sps:$4 sm:$0xff]  }
  0x5a   :  { %345 = vperm.xlu1 %4358, %v84_v2   ;;  %1246 = vmatpush1.bf16.msra.mxu0 %v4383_v21  ;;  %v4429_v54 = vld [vmem:[#allocation2 + $0xb4] ss:$8 sps:$4 sm:$0xff]   ;;  %v4431_v55 = vld [vmem:[#allocation2 + $0x1b0] ss:$8 sps:$4 sm:$0xff]   ;;  %v4433_v56 = vld [vmem:[#allocation2 + $0x1c4] ss:$8 sps:$4 sm:$0xff]  }
  0x5b   :  { %1247 = vmatprep.subr.bf16.mxu0 %v4385_v22  ;;  %1205 = vmatpush1.bf16.msra.mxu1 %v4384_v25  ;;  %v4432_v57 = vld [vmem:[#allocation2 + $0xb0] ss:$8 sps:$4 sm:$0xff]   ;;  %v4435_v58 = vld [vmem:[#allocation2 + $0xc4] ss:$8 sps:$4 sm:$0xff]   ;;  %v4437_v59 = vld [vmem:[#allocation2 + $0x1c0] ss:$8 sps:$4 sm:$0xff]  }
  0x5c   :  { %1206 = vmatprep.subr.bf16.mxu1 %v4387_v26  ;;  %v4439_v60 = vld [vmem:[#allocation2 + $0x1d4] ss:$8 sps:$4 sm:$0xff]   ;;  %v4438_v61 = vld [vmem:[#allocation2 + $0xc0] ss:$8 sps:$4 sm:$0xff]   ;;  %v4443_v63 = vld [vmem:[#allocation2 + $0x1d0] ss:$8 sps:$4 sm:$0xff]  }
  0x5d   :  { %v4441_v62 = vld [vmem:[#allocation2 + $0xd4] ss:$8 sps:$4 sm:$0xff]   ;;  %v4444_v0 = vld [vmem:[#allocation2 + $0xd0] ss:$8 sps:$4 sm:$0xff]   ;;  %v4445_v1 = vld [vmem:[#allocation2 + $0x1e4] ss:$8 sps:$4 sm:$0xff]  }
  0x5e   :  { %4359 = vset.pattern.permute.xlu1 %v5142_v24  ;;  %1248 = vmatpush1.bf16.msra.mxu0 %v4389_v27  ;;  %v4449_v3 = vld [vmem:[#allocation2 + $0x1e0] ss:$8 sps:$4 sm:$0xff]   ;;  %v4451_v5 = vld [vmem:[#allocation2 + $0x1f4] ss:$8 sps:$4 sm:$0xff]   ;;  %v4455_v7 = vld [vmem:[#allocation2 + $0x1f0] ss:$8 sps:$4 sm:$0xff]  }
  0x5f   :  { %388 = vperm.xlu1 %4359, %v84_v2   ;;  %1249 = vmatprep.subr.bf16.mxu0 %v4391_v28  ;;  %v4447_v2 = vld [vmem:[#allocation2 + $0xe4] ss:$8 sps:$4 sm:$0xff]   ;;  %v4450_v4 = vld [vmem:[#allocation2 + $0xe0] ss:$8 sps:$4 sm:$0xff]   ;;  %v4453_v6 = vld [vmem:[#allocation2 + $0xf4] ss:$8 sps:$4 sm:$0xff]  }
  0x60   :  { %1207 = vmatpush1.bf16.msra.mxu1 %v4390_v29  ;;  %v4456_v8 = vld [vmem:[#allocation2 + $0xf0] ss:$8 sps:$4 sm:$0xff]   ;;  %v4459_v9 = vld [vmem:[#allocation2 + $0x204] ss:$8 sps:$4 sm:$0xff]   ;;  %v5257_v11 = vand.u32 127, %v85_v10  ;;  %v5143_v20 = vmov 0.0  }
  0x61   :  { %1208 = vmatprep.subr.bf16.mxu1 %v4393_v30 }
  0x62   :  { %1250 = vmatpush1.bf16.msra.mxu0 %v4395_v31  ;;  %v5260_v12 = vadd.s32 128, %v5257_v11  ;;  %v5263_v13 = vadd.s32 512, %v5257_v11  ;;  %v5266_v14 = vadd.s32 768, %v5257_v11  ;;  %v5273_v17 = vadd.s32 384, %v5257_v11 }
  0x63   :  { %1251 = vmatprep.subr.bf16.mxu0 %v4397_v32  ;;  %v5280_v18 = vadd.s32 256, %v5257_v11  ;;  %v5283_v19 = vadd.s32 640, %v5257_v11  ;;  %v5300_v26 = vadd.s32 896, %v5257_v11 }
  0x64   :  { %1209 = vmatpush1.bf16.msra.mxu1 %v4396_v33 }
  0x65   :  { %1210 = vmatprep.subr.bf16.mxu1 %v4399_v34 }
  0x66   :  { %1252 = vmatpush1.bf16.msra.mxu0 %v4401_v35 }
  0x67   :  { %1253 = vmatprep.subr.bf16.mxu0 %v4403_v36 }
  0x68   :  { %1211 = vmatpush1.bf16.msra.mxu1 %v4402_v37 }
  0x69   :  { %1212 = vmatprep.subr.bf16.mxu1 %v4405_v38 }
  0x6a   :  { %1254 = vmatpush1.bf16.msra.mxu0 %v4407_v39 }
  0x6b   :  { %1255 = vmatprep.subr.bf16.mxu0 %v4409_v40 }
  0x6c   :  { %1213 = vmatpush1.bf16.msra.mxu1 %v4408_v41 }
  0x6d   :  { %1214 = vmatprep.subr.bf16.mxu1 %v4411_v42 }
  0x6e   :  { %1256 = vmatpush1.bf16.msra.mxu0 %v4413_v43 }
  0x6f   :  { %1257 = vmatprep.subr.bf16.mxu0 %v4415_v44 }
  0x70   :  { %1215 = vmatpush1.bf16.msra.mxu1 %v4414_v45 }
  0x71   :  { %1216 = vmatprep.subr.bf16.mxu1 %v4417_v46 }
  0x72   :  { %1258 = vmatpush1.bf16.msra.mxu0 %v4419_v47 }
  0x73   :  { %1259 = vmatprep.subr.bf16.mxu0 %v4421_v48 }
  0x74   :  { %1217 = vmatpush1.bf16.msra.mxu1 %v4420_v49 }
  0x75   :  { %1218 = vmatprep.subr.bf16.mxu1 %v4423_v50 }
  0x76   :  { %1260 = vmatpush1.bf16.msra.mxu0 %v4425_v51 }
  0x77   :  { %1261 = vmatprep.subr.bf16.mxu0 %v4427_v53 }
  0x78   :  { %1219 = vmatpush1.bf16.msra.mxu1 %v4426_v52 }
  0x79   :  { %1220 = vmatprep.subr.bf16.mxu1 %v4429_v54 }
  0x7a   :  { %1262 = vmatpush1.bf16.msra.mxu0 %v4431_v55 }
  0x7b   :  { %1263 = vmatprep.subr.bf16.mxu0 %v4433_v56 }
  0x7c   :  { %1221 = vmatpush1.bf16.msra.mxu1 %v4432_v57 }
  0x7d   :  { %1222 = vmatprep.subr.bf16.mxu1 %v4435_v58 }
  0x7e   :  { %1264 = vmatpush1.bf16.msra.mxu0 %v4437_v59 }
  0x7f   :  { %1265 = vmatprep.subr.bf16.mxu0 %v4439_v60 }
  0x80   :  { %1223 = vmatpush1.bf16.msra.mxu1 %v4438_v61 }
  0x81   :  { %1224 = vmatprep.subr.bf16.mxu1 %v4441_v62 }
  0x82   :  { %1266 = vmatpush1.bf16.msra.mxu0 %v4443_v63 }
  0x83   :  { %1267 = vmatprep.subr.bf16.mxu0 %v4445_v1 }
  0x84   :  { %1225 = vmatpush1.bf16.msra.mxu1 %v4444_v0 }
  0x85   :  { %1226 = vmatprep.subr.bf16.mxu1 %v4447_v2 }
  0x86   :  { %1268 = vmatpush1.bf16.msra.mxu0 %v4449_v3 }
  0x87   :  { %1269 = vmatprep.subr.bf16.mxu0 %v4451_v5 }
  0x88   :  { %1227 = vmatpush1.bf16.msra.mxu1 %v4450_v4 }
  0x89   :  { %1228 = vmatprep.subr.bf16.mxu1 %v4453_v6 }
  0x8a   :  { %1270 = vmatpush1.bf16.msra.mxu0 %v4455_v7 }
  0x8b   :  { %1280 = vmatprep.subr.bf16.mxu0 %v4459_v9 }
  0x8c   :  { %1229 = vmatpush1.bf16.msra.mxu1 %v4456_v8 }
  0xca   :  { %v5268_v15 = vpop.permute.xlu1 %173  ;;  %v5270_v16 = vpop.permute.xlu0 %95 }
  0xcb   :  { %vm101_vm0 = vcmp.eq.s32.totalorder %v5270_v16, %v5263_v13  ;;  %vm103_vm1 = vcmp.eq.s32.totalorder %v5270_v16, %v5266_v14  ;;  %vm98_vm2 = vcmp.eq.s32.totalorder %v5270_v16, %v5260_v12  ;;  %vm176_vm3 = vcmp.eq.s32.totalorder %v5268_v15, %v5260_v12 }
  0xcc   :  { %v5286_v21 = vsel %vm101_vm0, 1.0, %v5143_v20  ;;  %v5289_v22 = vsel %vm103_vm1, 1.0, %v5143_v20  ;;  %v3790_v24 = vsel %vm98_vm2, 1.0, %v5143_v20  ;;  %v3806_v25 = vsel %vm176_vm3, 1.0, %v5143_v20 }
  0xcd   :  { %v125_v23 = vpack.c.bf16 %v5286_v21, %v5286_v21  ;;  %v127_v27 = vpack.c.bf16 %v5289_v22, %v5289_v22  ;;  %v122_v28 = vpack.c.bf16 %v3790_v24, %v3790_v24  ;;  %vm100_vm4 = vcmp.eq.s32.totalorder %v5270_v16, %v5273_v17  ;;  %v4474_v22 = vld [vmem:[#allocation2 + $0x254] ss:$8 sps:$4 sm:$0xff]  }
  0xce   :  { %vm178_vm5 = vcmp.eq.s32.totalorder %v5268_v15, %v5273_v17  ;;  %v200_v31 = vpack.c.bf16 %v3806_v25, %v3806_v25  ;;  %v3792_v32 = vsel %vm100_vm4, 1.0, %v5143_v20  ;;  %vm97_vm6 = vcmp.eq.s32.totalorder %v5270_v16, %v5257_v11 }
  0xcf   :  { %v5308_v29 = vpop.permute.xlu1 %216  ;;  %v5310_v30 = vpop.permute.xlu0 %130  ;;  %v3808_v33 = vsel %vm178_vm5, 1.0, %v5143_v20  ;;  %vm175_vm11 = vcmp.eq.s32.totalorder %v5268_v15, %v5257_v11  ;;  %v124_v41 = vpack.c.bf16 %v3792_v32, %v3792_v32  ;;  %v3789_v48 = vsel %vm97_vm6, 1.0, %v5143_v20 }
  0xd0   :  { %vm136_vm7 = vcmp.eq.s32.totalorder %v5310_v30, %v5263_v13  ;;  %vm138_vm8 = vcmp.eq.s32.totalorder %v5310_v30, %v5266_v14  ;;  %vm133_vm9 = vcmp.eq.s32.totalorder %v5310_v30, %v5260_v12  ;;  %vm219_vm10 = vcmp.eq.s32.totalorder %v5308_v29, %v5260_v12 }
  0xd1   :  { %v5325_v34 = vsel %vm136_vm7, 1.0, %v5143_v20  ;;  %v5328_v35 = vsel %vm138_vm8, 1.0, %v5143_v20  ;;  %v3798_v36 = vsel %vm133_vm9, 1.0, %v5143_v20  ;;  %v3814_v37 = vsel %vm219_vm10, 1.0, %v5143_v20 }
  0xd2   :  { %v160_v38 = vpack.c.bf16 %v5325_v34, %v5325_v34  ;;  %v157_v39 = vpack.c.bf16 %v3798_v36, %v3798_v36  ;;  %v243_v40 = vpack.c.bf16 %v3814_v37, %v3814_v37  ;;  %vm135_vm12 = vcmp.eq.s32.totalorder %v5310_v30, %v5273_v17  ;;  %v4460_v34 = vld [vmem:[#allocation2 + $0x210] ss:$8 sps:$4 sm:$0xff]  }
  0xd3   :  { %v202_v42 = vpack.c.bf16 %v3808_v33, %v3808_v33  ;;  %vm221_vm13 = vcmp.eq.s32.totalorder %v5308_v29, %v5273_v17  ;;  %v3800_v46 = vsel %vm135_vm12, 1.0, %v5143_v20  ;;  %v121_v60 = vpack.c.bf16 %v3789_v48, %v3789_v48 }
  0xd4   :  { %v5340_v43 = vpop.permute.xlu1 %259  ;;  %v5342_v44 = vpop.permute.xlu0 %302  ;;  %v165_v45 = vadd.bf16 %v157_v39, %v122_v28  ;;  %v3816_v47 = vsel %vm221_vm13, 1.0, %v5143_v20  ;;  %v159_v49 = vpack.c.bf16 %v3800_v46, %v3800_v46  ;;  %vm132_vm2 = vcmp.eq.s32.totalorder %v5310_v30, %v5257_v11 }
  0xd5   :  { %vm262_vm14 = vcmp.eq.s32.totalorder %v5340_v43, %v5260_v12  ;;  %vm305_vm15 = vcmp.eq.s32.totalorder %v5342_v44, %v5260_v12  ;;  %v245_v50 = vpack.c.bf16 %v3816_v47, %v3816_v47  ;;  %vm264_vm0 = vcmp.eq.s32.totalorder %v5340_v43, %v5273_v17 }
  0xd6   :  { %v208_v51 = vadd.bf16 %v200_v31, %v165_v45  ;;  %v3822_v52 = vsel %vm262_vm14, 1.0, %v5143_v20  ;;  %v3830_v53 = vsel %vm305_vm15, 1.0, %v5143_v20  ;;  %v167_v56 = vadd.bf16 %v159_v49, %v124_v41 }
  0xd7   :  { %v286_v54 = vpack.c.bf16 %v3822_v52, %v3822_v52  ;;  %v329_v55 = vpack.c.bf16 %v3830_v53, %v3830_v53  ;;  %v3824_v57 = vsel %vm264_vm0, 1.0, %v5143_v20  ;;  %vm307_vm1 = vcmp.eq.s32.totalorder %v5342_v44, %v5273_v17 }
  0xd8   :  { %v251_v58 = vadd.bf16 %v243_v40, %v208_v51  ;;  %v288_v59 = vpack.c.bf16 %v3824_v57, %v3824_v57  ;;  %v210_v62 = vadd.bf16 %v202_v42, %v167_v56  ;;  %v3832_v63 = vsel %vm307_vm1, 1.0, %v5143_v20 }
  0xd9   :  { %v5361_v61 = vpop.permute.xlu1 %345  ;;  %v3805_v0 = vsel %vm175_vm11, 1.0, %v5143_v20  ;;  %v331_v2 = vpack.c.bf16 %v3832_v63, %v3832_v63  ;;  %v3797_v6 = vsel %vm132_vm2, 1.0, %v5143_v20  ;;  %vm218_vm5 = vcmp.eq.s32.totalorder %v5308_v29, %v5257_v11 }
  0xda   :  { %v294_v1 = vadd.bf16 %v286_v54, %v251_v58  ;;  %vm348_vm3 = vcmp.eq.s32.totalorder %v5361_v61, %v5260_v12  ;;  %vm350_vm4 = vcmp.eq.s32.totalorder %v5361_v61, %v5273_v17  ;;  %v253_v4 = vadd.bf16 %v245_v50, %v210_v62 }
  0xdb   :  { %v3838_v3 = vsel %vm348_vm3, 1.0, %v5143_v20  ;;  %v3840_v5 = vsel %vm350_vm4, 1.0, %v5143_v20  ;;  %v156_v24 = vpack.c.bf16 %v3797_v6, %v3797_v6  ;;  %v199_v28 = vpack.c.bf16 %v3805_v0, %v3805_v0 }
  0xdc   :  { %v337_v7 = vadd.bf16 %v329_v55, %v294_v1  ;;  %v372_v8 = vpack.c.bf16 %v3838_v3, %v3838_v3  ;;  %v374_v9 = vpack.c.bf16 %v3840_v5, %v3840_v5  ;;  %v296_v25 = vadd.bf16 %v288_v59, %v253_v4 }
  0xdd   :  { %vm261_vm6 = vcmp.eq.s32.totalorder %v5340_v43, %v5257_v11  ;;  %v164_v33 = vadd.bf16 %v156_v24, %v121_v60  ;;  %v3813_v36 = vsel %vm218_vm5, 1.0, %v5143_v20  ;;  %vm304_vm9 = vcmp.eq.s32.totalorder %v5342_v44, %v5257_v11 }
  0xde   :  { %v5381_v31 = vpop.permute.xlu1 %388  ;;  %v380_v32 = vadd.bf16 %v372_v8, %v337_v7  ;;  %v3821_v37 = vsel %vm261_vm6, 1.0, %v5143_v20  ;;  %v339_v39 = vadd.bf16 %v331_v2, %v296_v25  ;;  %v242_v40 = vpack.c.bf16 %v3813_v36, %v3813_v36 }
  0xdf   :  { %vm391_vm7 = vcmp.eq.s32.totalorder %v5381_v31, %v5260_v12  ;;  %vm393_vm8 = vcmp.eq.s32.totalorder %v5381_v31, %v5273_v17  ;;  %v207_v45 = vadd.bf16 %v199_v28, %v164_v33  ;;  %v285_v46 = vpack.c.bf16 %v3821_v37, %v3821_v37 }
  0xe0   :  { %v3846_v41 = vsel %vm391_vm7, 1.0, %v5143_v20  ;;  %v3848_v42 = vsel %vm393_vm8, 1.0, %v5143_v20  ;;  %v382_v48 = vadd.bf16 %v374_v9, %v339_v39  ;;  %v3829_v12 = vsel %vm304_vm9, 1.0, %v5143_v20 }
  0xe1   :  { %v415_v47 = vpack.c.bf16 %v3846_v41, %v3846_v41  ;;  %v417_v49 = vpack.c.bf16 %v3848_v42, %v3848_v42  ;;  %v250_v50 = vadd.bf16 %v242_v40, %v207_v45  ;;  %vm347_vm10 = vcmp.eq.s32.totalorder %v5361_v61, %v5257_v11 }
  0xe2   :  { %vm390_vm11 = vcmp.eq.s32.totalorder %v5381_v31, %v5257_v11  ;;  %v328_v52 = vpack.c.bf16 %v3829_v12, %v3829_v12  ;;  %v3837_v53 = vsel %vm347_vm10, 1.0, %v5143_v20  ;;  %vm99_vm12 = vcmp.eq.s32.totalorder %v5270_v16, %v5280_v18 }
  0xe3   :  { %v423_v17 = vadd.bf16 %v415_v47, %v380_v32  ;;  %v425_v51 = vadd.bf16 %v417_v49, %v382_v48  ;;  %v293_v54 = vadd.bf16 %v285_v46, %v250_v50  ;;  %v371_v55 = vpack.c.bf16 %v3837_v53, %v3837_v53 }
  0xe4   :  { %v3845_v56 = vsel %vm390_vm11, 1.0, %v5143_v20  ;;  %v162_v57 = vpack.c.bf16 %v5328_v35, %v5328_v35  ;;  %v3791_v58 = vsel %vm99_vm12, 1.0, %v5143_v20  ;;  %vm134_vm13 = vcmp.eq.s32.totalorder %v5310_v30, %v5280_v18 }
  0xe5   :  { %1230 = vmatprep.mubr.bf16.mxu1 %v423_v17  ;;  %1271 = vmatprep.mubr.bf16.mxu0 %v425_v51  ;;  %vm177_vm14 = vcmp.eq.s32.totalorder %v5268_v15, %v5280_v18  ;;  %v336_v11 = vadd.bf16 %v328_v52, %v293_v54  ;;  %v414_v59 = vpack.c.bf16 %v3845_v56, %v3845_v56  ;;  %v3799_v60 = vsel %vm134_vm13, 1.0, %v5143_v20  ;;  %v4457_v51 = vld [vmem:[#allocation2 + $0x200] ss:$8 sps:$4 sm:$0xff]  }
  0xe6   :  { %v3807_v62 = vsel %vm177_vm14, 1.0, %v5143_v20  ;;  %v123_v63 = vpack.c.bf16 %v3791_v58, %v3791_v58  ;;  %v158_v0 = vpack.c.bf16 %v3799_v60, %v3799_v60  ;;  %vm220_vm15 = vcmp.eq.s32.totalorder %v5308_v29, %v5280_v18 }
  0xe7   :  { %vm263_vm0 = vcmp.eq.s32.totalorder %v5340_v43, %v5280_v18  ;;  %v379_v1 = vadd.bf16 %v371_v55, %v336_v11  ;;  %v3815_v2 = vsel %vm220_vm15, 1.0, %v5143_v20  ;;  %vm306_vm1 = vcmp.eq.s32.totalorder %v5342_v44, %v5280_v18 }
  0xe8   :  { %v3823_v3 = vsel %vm263_vm0, 1.0, %v5143_v20  ;;  %vm179_vm2 = vcmp.eq.s32.totalorder %v5268_v15, %v5263_v13  ;;  %v166_v4 = vadd.bf16 %v158_v0, %v123_v63  ;;  %v201_v5 = vpack.c.bf16 %v3807_v62, %v3807_v62 }
  0xe9   :  { %v244_v6 = vpack.c.bf16 %v3815_v2, %v3815_v2  ;;  %v3831_v7 = vsel %vm306_vm1, 1.0, %v5143_v20  ;;  %v422_v8 = vadd.bf16 %v414_v59, %v379_v1  ;;  %v287_v9 = vpack.c.bf16 %v3823_v3, %v3823_v3  ;;  %v4462_v59 = vld [vmem:[#allocation2 + $0x214] ss:$8 sps:$4 sm:$0xff]   ;;  %v4465_v3 = vld [vmem:[#allocation2 + $0x224] ss:$8 sps:$4 sm:$0xff]  }
  0xea   :  { %vm349_vm3 = vcmp.eq.s32.totalorder %v5361_v61, %v5280_v18  ;;  %vm392_vm4 = vcmp.eq.s32.totalorder %v5381_v31, %v5280_v18  ;;  %v209_v24 = vadd.bf16 %v201_v5, %v166_v4  ;;  %v330_v25 = vpack.c.bf16 %v3831_v7, %v3831_v7 }
  0xeb   :  { %v3839_v28 = vsel %vm349_vm3, 1.0, %v5143_v20  ;;  %vm102_vm5 = vcmp.eq.s32.totalorder %v5270_v16, %v5283_v19  ;;  %1231 = vmatmul.mubr.bf16.vlgmr.msra.gmra.mrb[0].mxu1 %v422_v8  ;;  %v3847_v33 = vsel %vm392_vm4, 1.0, %v5143_v20  ;;  %vm137_vm6 = vcmp.eq.s32.totalorder %v5310_v30, %v5283_v19 }
  0xec   :  { %v373_v32 = vpack.c.bf16 %v3839_v28, %v3839_v28  ;;  %v3794_v36 = vsel %vm102_vm5, 1.0, %v5143_v20  ;;  %v252_v37 = vadd.bf16 %v244_v6, %v209_v24  ;;  %v3802_v18 = vsel %vm137_vm6, 1.0, %v5143_v20 }
  0xed   :  { %v126_v39 = vpack.c.bf16 %v3794_v36, %v3794_v36  ;;  %vm180_vm7 = vcmp.eq.s32.totalorder %v5268_v15, %v5283_v19  ;;  %v161_v40 = vpack.c.bf16 %v3802_v18, %v3802_v18  ;;  %vm223_vm8 = vcmp.eq.s32.totalorder %v5308_v29, %v5283_v19 }
  0xee   :  { %v3810_v41 = vsel %vm180_vm7, 1.0, %v5143_v20  ;;  %vm266_vm9 = vcmp.eq.s32.totalorder %v5340_v43, %v5283_v19  ;;  %v295_v42 = vadd.bf16 %v287_v9, %v252_v37  ;;  %v416_v45 = vpack.c.bf16 %v3847_v33, %v3847_v33  ;;  %v4463_v33 = vld [vmem:[#allocation2 + $0x220] ss:$8 sps:$4 sm:$0xff]  }
  0xef   :  { %v3818_v46 = vsel %vm223_vm8, 1.0, %v5143_v20  ;;  %v3826_v47 = vsel %vm266_vm9, 1.0, %v5143_v20  ;;  %v169_v48 = vadd.bf16 %v161_v40, %v126_v39  ;;  %v204_v49 = vpack.c.bf16 %v3810_v41, %v3810_v41 }
  0xf0   :  { %v247_v50 = vpack.c.bf16 %v3818_v46, %v3818_v46  ;;  %vm309_vm10 = vcmp.eq.s32.totalorder %v5342_v44, %v5283_v19  ;;  %v338_v12 = vadd.bf16 %v330_v25, %v295_v42  ;;  %vm352_vm11 = vcmp.eq.s32.totalorder %v5361_v61, %v5283_v19  ;;  %v4466_v46 = vld [vmem:[#allocation2 + $0x230] ss:$8 sps:$4 sm:$0xff]  }
  0xf1   :  { %v3834_v17 = vsel %vm309_vm10, 1.0, %v5143_v20  ;;  %vm395_vm12 = vcmp.eq.s32.totalorder %v5381_v31, %v5283_v19  ;;  %v212_v52 = vadd.bf16 %v204_v49, %v169_v48  ;;  %v290_v53 = vpack.c.bf16 %v3826_v47, %v3826_v47 }
  0xf2   :  { %v333_v54 = vpack.c.bf16 %v3834_v17, %v3834_v17  ;;  %v3842_v55 = vsel %vm352_vm11, 1.0, %v5143_v20  ;;  %v381_v56 = vadd.bf16 %v373_v32, %v338_v12  ;;  %v3850_v11 = vsel %vm395_vm12, 1.0, %v5143_v20  ;;  %v4471_v12 = vld [vmem:[#allocation2 + $0x244] ss:$8 sps:$4 sm:$0xff]  }
  0xf3   :  { %v376_v58 = vpack.c.bf16 %v3842_v55, %v3842_v55  ;;  %v168_v60 = vadd.bf16 %v160_v38, %v125_v23  ;;  %v255_v62 = vadd.bf16 %v247_v50, %v212_v52  ;;  %v3809_v19 = vsel %vm179_vm2, 1.0, %v5143_v20 }
  0xf4   :  { %vm222_vm13 = vcmp.eq.s32.totalorder %v5308_v29, %v5263_v13  ;;  %vm265_vm14 = vcmp.eq.s32.totalorder %v5340_v43, %v5263_v13  ;;  %v424_v63 = vadd.bf16 %v416_v45, %v381_v56  ;;  %v203_v0 = vpack.c.bf16 %v3809_v19, %v3809_v19 }
  0xf5   :  { %v3817_v21 = vsel %vm222_vm13, 1.0, %v5143_v20  ;;  %v3825_v1 = vsel %vm265_vm14, 1.0, %v5143_v20  ;;  %vm181_vm15 = vcmp.eq.s32.totalorder %v5268_v15, %v5266_v14  ;;  %v298_v23 = vadd.bf16 %v290_v53, %v255_v62 }
  0xf6   :  { %v246_v38 = vpack.c.bf16 %v3817_v21, %v3817_v21  ;;  %v289_v2 = vpack.c.bf16 %v3825_v1, %v3825_v1  ;;  %vm308_vm0 = vcmp.eq.s32.totalorder %v5342_v44, %v5263_v13  ;;  %1272 = vmatmul.mubr.bf16.vlgmr.msra.gmra.mrb[0].mxu0 %v424_v63  ;;  %v211_v4 = vadd.bf16 %v203_v0, %v168_v60  ;;  %v4469_v60 = vld [vmem:[#allocation2 + $0x240] ss:$8 sps:$4 sm:$0xff]  }
  0xf7   :  { %v3833_v5 = vsel %vm308_vm0, 1.0, %v5143_v20  ;;  %vm351_vm1 = vcmp.eq.s32.totalorder %v5361_v61, %v5263_v13  ;;  %vm394_vm2 = vcmp.eq.s32.totalorder %v5381_v31, %v5263_v13  ;;  %1281 = vmatpush1.bf16.msra.mxu0 %v4457_v51  ;;  %v341_v6 = vadd.bf16 %v333_v54, %v298_v23  ;;  %v4468_v13 = vld [vmem:[#allocation2 + $0x234] ss:$8 sps:$4 sm:$0xff]  }
  0xf8   :  { %v419_v7 = vpack.c.bf16 %v3850_v11, %v3850_v11  ;;  %v3841_v8 = vsel %vm351_vm1, 1.0, %v5143_v20  ;;  %v3849_v9 = vsel %vm394_vm2, 1.0, %v5143_v20  ;;  %1282 = vmatprep.subr.bf16.mxu0 %v4462_v59  ;;  %v254_v24 = vadd.bf16 %v246_v38, %v211_v4 }
  0xf9   :  { %v332_v25 = vpack.c.bf16 %v3833_v5, %v3833_v5  ;;  %v375_v28 = vpack.c.bf16 %v3841_v8, %v3841_v8  ;;  %vm104_vm3 = vcmp.eq.s32.totalorder %v5270_v16, %v5300_v26  ;;  %v384_v32 = vadd.bf16 %v376_v58, %v341_v6  ;;  %v4475_v8 = vld [vmem:[#allocation2 + $0x260] ss:$8 sps:$4 sm:$0xff]  }
  0xfa   :  { %v3796_v36 = vsel %vm104_vm3, 1.0, %v5143_v20  ;;  %vm139_vm4 = vcmp.eq.s32.totalorder %v5310_v30, %v5300_v26  ;;  %vm182_vm5 = vcmp.eq.s32.totalorder %v5268_v15, %v5300_v26  ;;  %v297_v37 = vadd.bf16 %v289_v2, %v254_v24  ;;  %v4478_v24 = vld [vmem:[#allocation2 + $0x270] ss:$8 sps:$4 sm:$0xff]  }
  0xfb   :  { %v418_v39 = vpack.c.bf16 %v3849_v9, %v3849_v9  ;;  %v3804_v18 = vsel %vm139_vm4, 1.0, %v5143_v20  ;;  %v3812_v40 = vsel %vm182_vm5, 1.0, %v5143_v20  ;;  %v427_v41 = vadd.bf16 %v419_v7, %v384_v32  ;;  %1283 = vmatpush1.bf16.msra.mxu0 %v4460_v34  ;;  %v4477_v34 = vld [vmem:[#allocation2 + $0x264] ss:$8 sps:$4 sm:$0xff]   ;;  %v4484_v32 = vld [vmem:[#allocation2 + $0x290] ss:$8 sps:$4 sm:$0xff]  }
  0xfc   :  { %v128_v16 = vpack.c.bf16 %v3796_v36, %v3796_v36  ;;  %v163_v42 = vpack.c.bf16 %v3804_v18, %v3804_v18  ;;  %vm225_vm6 = vcmp.eq.s32.totalorder %v5308_v29, %v5300_v26  ;;  %1284 = vmatprep.subr.bf16.mxu0 %v4465_v3  ;;  %v340_v45 = vadd.bf16 %v332_v25, %v297_v37  ;;  %v4483_v25 = vld [vmem:[#allocation2 + $0x284] ss:$8 sps:$4 sm:$0xff]   ;;  %v4487_v36 = vld [vmem:[#allocation2 + $0x2a0] ss:$8 sps:$4 sm:$0xff]   ;;  %v4490_v37 = vld [vmem:[#allocation2 + $0x2b0] ss:$8 sps:$4 sm:$0xff]  }
  0xfd   :  { %v3820_v30 = vsel %vm225_vm6, 1.0, %v5143_v20  ;;  %vm268_vm7 = vcmp.eq.s32.totalorder %v5340_v43, %v5300_v26  ;;  %vm311_vm8 = vcmp.eq.s32.totalorder %v5342_v44, %v5300_v26  ;;  %1312 = vmatprep.mubr.bf16.mxu0 %v427_v41  ;;  %v206_v48 = vpack.c.bf16 %v3812_v40, %v3812_v40  ;;  %v4493_v18 = vld [vmem:[#allocation2 + $0x2c0] ss:$8 sps:$4 sm:$0xff]   ;;  %v4498_v40 = vld [vmem:[#allocation2 + $0x2d4] ss:$8 sps:$4 sm:$0xff]  }
  0xfe   :  { %v171_v47 = vadd.bf16 %v163_v42, %v128_v16  ;;  %v3828_v49 = vsel %vm268_vm7, 1.0, %v5143_v20  ;;  %v3836_v50 = vsel %vm311_vm8, 1.0, %v5143_v20  ;;  %v383_v17 = vadd.bf16 %v375_v28, %v340_v45  ;;  %v4486_v28 = vld [vmem:[#allocation2 + $0x294] ss:$8 sps:$4 sm:$0xff]   ;;  %v4496_v41 = vld [vmem:[#allocation2 + $0x2d0] ss:$8 sps:$4 sm:$0xff]  }
  0xff   :  { %v249_v51 = vpack.c.bf16 %v3820_v30, %v3820_v30  ;;  %v292_v52 = vpack.c.bf16 %v3828_v49, %v3828_v49  ;;  %vm354_vm9 = vcmp.eq.s32.totalorder %v5361_v61, %v5300_v26  ;;  %1285 = vmatpush1.bf16.msra.mxu0 %v4463_v33  ;;  %vm397_vm10 = vcmp.eq.s32.totalorder %v5381_v31, %v5300_v26  ;;  %v4489_v33 = vld [vmem:[#allocation2 + $0x2a4] ss:$8 sps:$4 sm:$0xff]   ;;  %v4499_v42 = vld [vmem:[#allocation2 + $0x2e0] ss:$8 sps:$4 sm:$0xff]   ;;  %v4504_v45 = vld [vmem:[#allocation2 + $0x2f4] ss:$8 sps:$4 sm:$0xff]  }
 0x100   :  { %v214_v53 = vadd.bf16 %v206_v48, %v171_v47  ;;  %v3844_v54 = vsel %vm354_vm9, 1.0, %v5143_v20  ;;  %v170_v55 = vadd.bf16 %v162_v57, %v127_v27  ;;  %1286 = vmatprep.subr.bf16.mxu0 %v4468_v13  ;;  %v5508_v56 = vadd.bf16 %v418_v39, %v383_v17  ;;  %v4492_v13 = vld [vmem:[#allocation2 + $0x2b4] ss:$8 sps:$4 sm:$0xff]   ;;  %v4495_v39 = vld [vmem:[#allocation2 + $0x2c4] ss:$8 sps:$4 sm:$0xff]  }
 0x101   :  { %v335_v58 = vpack.c.bf16 %v3836_v50, %v3836_v50  ;;  %v3852_v11 = vsel %vm397_vm10, 1.0, %v5143_v20  ;;  %v3811_v59 = vsel %vm181_vm15, 1.0, %v5143_v20  ;;  %v378_v62 = vpack.c.bf16 %v3844_v54, %v3844_v54  ;;  %v4501_v16 = vld [vmem:[#allocation2 + $0x2e4] ss:$8 sps:$4 sm:$0xff]   ;;  %v4502_v30 = vld [vmem:[#allocation2 + $0x2f0] ss:$8 sps:$4 sm:$0xff]  }
 0x102   :  { %v257_v26 = vadd.bf16 %v249_v51, %v214_v53  ;;  %v205_v19 = vpack.c.bf16 %v3811_v59, %v3811_v59  ;;  %vm224_vm11 = vcmp.eq.s32.totalorder %v5308_v29, %v5266_v14  ;;  %vm267_vm12 = vcmp.eq.s32.totalorder %v5340_v43, %v5266_v14  ;;  %v4472_v43 = vld [vmem:[#allocation2 + $0x250] ss:$8 sps:$4 sm:$0xff]   ;;  %v4505_v47 = vld [vmem:[#allocation2 + $0x300] ss:$8 sps:$4 sm:$0xff]   ;;  %v4510_v48 = vld [vmem:[#allocation2 + $0x314] ss:$8 sps:$4 sm:$0xff]  }
 0x103   :  { %v3819_v27 = vsel %vm224_vm11, 1.0, %v5143_v20  ;;  %vm310_vm13 = vcmp.eq.s32.totalorder %v5342_v44, %v5266_v14  ;;  %vm353_vm14 = vcmp.eq.s32.totalorder %v5361_v61, %v5266_v14  ;;  %1287 = vmatpush1.bf16.msra.mxu0 %v4466_v46  ;;  %v3827_v63 = vsel %vm267_vm12, 1.0, %v5143_v20  ;;  %v4507_v46 = vld [vmem:[#allocation2 + $0x304] ss:$8 sps:$4 sm:$0xff]   ;;  %v4508_v49 = vld [vmem:[#allocation2 + $0x310] ss:$8 sps:$4 sm:$0xff]  }
 0x104   :  { %v300_v15 = vadd.bf16 %v292_v52, %v257_v26  ;;  %v213_v35 = vadd.bf16 %v205_v19, %v170_v55  ;;  %v248_v57 = vpack.c.bf16 %v3819_v27, %v3819_v27  ;;  %1288 = vmatprep.subr.bf16.mxu0 %v4471_v12  ;;  %v291_v29 = vpack.c.bf16 %v3827_v63, %v3827_v63  ;;  %v4513_v50 = vld [vmem:[#allocation2 + $0x324] ss:$8 sps:$4 sm:$0xff]   ;;  %v4511_v12 = vld [vmem:[#allocation2 + $0x320] ss:$8 sps:$4 sm:$0xff]   ;;  %v4516_v17 = vld [vmem:[#allocation2 + $0x334] ss:$8 sps:$4 sm:$0xff]  }
 0x105   :  { %v3835_v0 = vsel %vm310_vm13, 1.0, %v5143_v20  ;;  %v3843_v21 = vsel %vm353_vm14, 1.0, %v5143_v20  ;;  %vm396_vm15 = vcmp.eq.s32.totalorder %v5381_v31, %v5266_v14  ;;  %v421_v1 = vpack.c.bf16 %v3852_v11, %v3852_v11  ;;  %v4480_v14 = vld [vmem:[#allocation2 + $0x274] ss:$8 sps:$4 sm:$0xff]   ;;  %v4514_v51 = vld [vmem:[#allocation2 + $0x330] ss:$8 sps:$4 sm:$0xff]  }
 0x106   :  { %v343_v44 = vadd.bf16 %v335_v58, %v300_v15  ;;  %v256_v23 = vadd.bf16 %v248_v57, %v213_v35  ;;  %v334_v61 = vpack.c.bf16 %v3835_v0, %v3835_v0  ;;  %v3851_v38 = vsel %vm396_vm15, 1.0, %v5143_v20  ;;  %v4481_v20 = vld [vmem:[#allocation2 + $0x280] ss:$8 sps:$4 sm:$0xff]   ;;  %v4519_v52 = vld [vmem:[#allocation2 + $0x344] ss:$8 sps:$4 sm:$0xff]  }
 0x107   :  { %1289 = vmatpush1.bf16.msra.mxu0 %v4469_v60  ;;  %v377_v4 = vpack.c.bf16 %v3843_v21, %v3843_v21  ;;  %v420_v7 = vpack.c.bf16 %v3851_v38, %v3851_v38  ;;  %v4553_v53 = vld [vmem:[#allocation4] ss:$16 sps:$4 sm:$0xff]   ;;  %v4555_v54 = vld [vmem:[#allocation4 + $0x4] ss:$16 sps:$4 sm:$0xff]  }
 0x108   :  { %v386_v2 = vadd.bf16 %v378_v62, %v343_v44  ;;  %v299_v3 = vadd.bf16 %v291_v29, %v256_v23  ;;  %1290 = vmatprep.subr.bf16.mxu0 %v4474_v22  ;;  %v4558_v55 = vld [vmem:[#allocation4 + $0x24] ss:$16 sps:$4 sm:$0xff]   ;;  %v4517_v58 = vld [vmem:[#allocation2 + $0x340] ss:$8 sps:$4 sm:$0xff]   ;;  %1772 = vmatprep.subr.bf16.mxu1 %v4555_v54  ;;  %v4520_v60 = vld [vmem:[#allocation2 + $0x350] ss:$8 sps:$4 sm:$0xff]  }
 0x109   :  { %1773 = vmatpush1.bf16.msra.mxu1 %v4553_v53  ;;  %v4556_v11 = vld [vmem:[#allocation4 + $0x20] ss:$16 sps:$4 sm:$0xff]   ;;  %v4561_v59 = vld [vmem:[#allocation4 + $0x44] ss:$16 sps:$4 sm:$0xff]   ;;  %v4658_v53 = vld [vmem:[#allocation6 + $0x28] ss:$16 sps:$4 sm:$0xff]  }
 0x10a   :  { %v429_v5 = vadd.bf16 %v421_v1, %v386_v2  ;;  %v342_v6 = vadd.bf16 %v334_v61, %v299_v3  ;;  %1774 = vmatprep.subr.bf16.mxu1 %v4558_v55  ;;  %v4525_v26 = vld [vmem:[#allocation2 + $0x364] ss:$8 sps:$4 sm:$0xff]   ;;  %v4559_v62 = vld [vmem:[#allocation4 + $0x40] ss:$16 sps:$4 sm:$0xff]   ;;  %v4528_v27 = vld [vmem:[#allocation2 + $0x374] ss:$8 sps:$4 sm:$0xff]  }
 0x10b   :  { %1291 = vmatpush1.bf16.msra.mxu0 %v4472_v43  ;;  %v4564_v19 = vld [vmem:[#allocation4 + $0x64] ss:$16 sps:$4 sm:$0xff]   ;;  %v4523_v22 = vld [vmem:[#allocation2 + $0x360] ss:$8 sps:$4 sm:$0xff]   ;;  %v4526_v57 = vld [vmem:[#allocation2 + $0x370] ss:$8 sps:$4 sm:$0xff]  }
 0x10c   :  { %v385_v9 = vadd.bf16 %v377_v4, %v342_v6  ;;  %1292 = vmatprep.subr.bf16.mxu0 %v4477_v34  ;;  %v4562_v15 = vld [vmem:[#allocation4 + $0x60] ss:$16 sps:$4 sm:$0xff]   ;;  %v4567_v35 = vld [vmem:[#allocation4 + $0x84] ss:$16 sps:$4 sm:$0xff]   ;;  %v4666_v54 = vld [vmem:[#allocation6 + $0x4c] ss:$16 sps:$4 sm:$0xff]  }
 0x10d   :  { %1775 = vmatpush1.bf16.msra.mxu1 %v4556_v11  ;;  %v4531_v63 = vld [vmem:[#allocation2 + $0x384] ss:$8 sps:$4 sm:$0xff]   ;;  %v4565_v29 = vld [vmem:[#allocation4 + $0x80] ss:$16 sps:$4 sm:$0xff]   ;;  %v4534_v43 = vld [vmem:[#allocation2 + $0x394] ss:$8 sps:$4 sm:$0xff]  }
 0x10e   :  { %v5530_v31 = vadd.bf16 %v420_v7, %v385_v9  ;;  %1776 = vmatprep.subr.bf16.mxu1 %v4561_v59  ;;  %v4570_v0 = vld [vmem:[#allocation4 + $0xa4] ss:$16 sps:$4 sm:$0xff]   ;;  %v4529_v21 = vld [vmem:[#allocation2 + $0x380] ss:$8 sps:$4 sm:$0xff]   ;;  %v4532_v23 = vld [vmem:[#allocation2 + $0x390] ss:$8 sps:$4 sm:$0xff]  }
 0x10f   :  { %1293 = vmatpush1.bf16.msra.mxu0 %v4475_v8  ;;  %v4568_v44 = vld [vmem:[#allocation4 + $0xa0] ss:$16 sps:$4 sm:$0xff]   ;;  %v4573_v1 = vld [vmem:[#allocation4 + $0xc4] ss:$16 sps:$4 sm:$0xff]   ;;  %v4664_v55 = vld [vmem:[#allocation6 + $0x48] ss:$16 sps:$4 sm:$0xff]  }
 0x110   :  { %1294 = vmatprep.subr.bf16.mxu0 %v4480_v14  ;;  %v4537_v61 = vld [vmem:[#allocation2 + $0x3a4] ss:$8 sps:$4 sm:$0xff]   ;;  %v4571_v34 = vld [vmem:[#allocation4 + $0xc0] ss:$16 sps:$4 sm:$0xff]   ;;  %v4540_v3 = vld [vmem:[#allocation2 + $0x3b4] ss:$8 sps:$4 sm:$0xff]  }
 0x111   :  { %1777 = vmatpush1.bf16.msra.mxu1 %v4559_v62  ;;  %v4576_v38 = vld [vmem:[#allocation4 + $0xe4] ss:$16 sps:$4 sm:$0xff]   ;;  %v4535_v2 = vld [vmem:[#allocation2 + $0x3a0] ss:$8 sps:$4 sm:$0xff]   ;;  %v4538_v6 = vld [vmem:[#allocation2 + $0x3b0] ss:$8 sps:$4 sm:$0xff]  }
 0x112   :  { %1778 = vmatprep.subr.bf16.mxu1 %v4564_v19  ;;  %v4574_v4 = vld [vmem:[#allocation4 + $0xe0] ss:$16 sps:$4 sm:$0xff]   ;;  %v4543_v7 = vld [vmem:[#allocation2 + $0x3c4] ss:$8 sps:$4 sm:$0xff]   ;;  %v4676_v59 = vld [vmem:[#allocation6 + $0x88] ss:$16 sps:$4 sm:$0xff]  }
 0x113   :  { %1295 = vmatpush1.bf16.msra.mxu0 %v4478_v24  ;;  %v4577_v8 = vld [vmem:[#allocation4 + $0x100] ss:$16 sps:$4 sm:$0xff]   ;;  %v4582_v9 = vld [vmem:[#allocation4 + $0x124] ss:$16 sps:$4 sm:$0xff]   ;;  %v4678_v11 = vld [vmem:[#allocation6 + $0x8c] ss:$16 sps:$4 sm:$0xff]  }
 0x114   :  { %1296 = vmatprep.subr.bf16.mxu0 %v4483_v25  ;;  %v4541_v14 = vld [vmem:[#allocation2 + $0x3c0] ss:$8 sps:$4 sm:$0xff]   ;;  %v4546_v24 = vld [vmem:[#allocation2 + $0x3d4] ss:$8 sps:$4 sm:$0xff]  }
 0x115   :  { %1779 = vmatpush1.bf16.msra.mxu1 %v4562_v15  ;;  %v4580_v25 = vld [vmem:[#allocation4 + $0x120] ss:$16 sps:$4 sm:$0xff]   ;;  %v4690_v62 = vld [vmem:[#allocation6 + $0xcc] ss:$16 sps:$4 sm:$0xff]   ;;  %v4688_v19 = vld [vmem:[#allocation6 + $0xc8] ss:$16 sps:$4 sm:$0xff]  }
 0x116   :  { %1780 = vmatprep.subr.bf16.mxu1 %v4567_v35  ;;  %v4702_v15 = vld [vmem:[#allocation6 + $0x10c] ss:$16 sps:$4 sm:$0xff]   ;;  %v4700_v35 = vld [vmem:[#allocation6 + $0x108] ss:$16 sps:$4 sm:$0xff]  }
 0x117   :  { %1297 = vmatpush1.bf16.msra.mxu0 %v4481_v20  ;;  %v4585_v20 = vld [vmem:[#allocation4 + $0x144] ss:$16 sps:$4 sm:$0xff]  }
 0x118   :  { %1298 = vmatprep.subr.bf16.mxu0 %v4486_v28  ;;  %v4544_v28 = vld [vmem:[#allocation2 + $0x3d0] ss:$8 sps:$4 sm:$0xff]  }
 0x119   :  { %1781 = vmatpush1.bf16.msra.mxu1 %v4565_v29  ;;  %v4714_v29 = vld [vmem:[#allocation6 + $0x14c] ss:$16 sps:$4 sm:$0xff]  }
 0x11a   :  { %1782 = vmatprep.subr.bf16.mxu1 %v4570_v0  ;;  %v4712_v0 = vld [vmem:[#allocation6 + $0x148] ss:$16 sps:$4 sm:$0xff]  }
 0x11b   :  { %1299 = vmatpush1.bf16.msra.mxu0 %v4484_v32  ;;  %v4549_v32 = vld [vmem:[#allocation2 + $0x3e4] ss:$8 sps:$4 sm:$0xff]  }
 0x11c   :  { %1300 = vmatprep.subr.bf16.mxu0 %v4489_v33  ;;  %v4583_v33 = vld [vmem:[#allocation4 + $0x140] ss:$16 sps:$4 sm:$0xff]  }
 0x11d   :  { %1783 = vmatpush1.bf16.msra.mxu1 %v4568_v44  ;;  %v4726_v44 = vld [vmem:[#allocation6 + $0x18c] ss:$16 sps:$4 sm:$0xff]  }
 0x11e   :  { %1784 = vmatprep.subr.bf16.mxu1 %v4573_v1  ;;  %v4724_v1 = vld [vmem:[#allocation6 + $0x188] ss:$16 sps:$4 sm:$0xff]  }
 0x11f   :  { %1301 = vmatpush1.bf16.msra.mxu0 %v4487_v36  ;;  %v4588_v36 = vld [vmem:[#allocation4 + $0x164] ss:$16 sps:$4 sm:$0xff]  }
 0x120   :  { %1302 = vmatprep.subr.bf16.mxu0 %v4492_v13  ;;  %v4547_v13 = vld [vmem:[#allocation2 + $0x3e0] ss:$8 sps:$4 sm:$0xff]  }
 0x121   :  { %1785 = vmatpush1.bf16.msra.mxu1 %v4571_v34 }
 0x122   :  { %1786 = vmatprep.subr.bf16.mxu1 %v4576_v38 }
 0x123   :  { %1303 = vmatpush1.bf16.msra.mxu0 %v4490_v37  ;;  %v4552_v37 = vld [vmem:[#allocation2 + $0x3f4] ss:$8 sps:$4 sm:$0xff]  }
 0x124   :  { %1304 = vmatprep.subr.bf16.mxu0 %v4495_v39  ;;  %v4586_v39 = vld [vmem:[#allocation4 + $0x160] ss:$16 sps:$4 sm:$0xff]  }
 0x125   :  { %1787 = vmatpush1.bf16.msra.mxu1 %v4574_v4 }
 0x127   :  { %1305 = vmatpush1.bf16.msra.mxu0 %v4493_v18  ;;  %v4591_v18 = vld [vmem:[#allocation4 + $0x184] ss:$16 sps:$4 sm:$0xff]  }
 0x128   :  { %1306 = vmatprep.subr.bf16.mxu0 %v4498_v40  ;;  %v4550_v40 = vld [vmem:[#allocation2 + $0x3f0] ss:$8 sps:$4 sm:$0xff]  }
 0x12b   :  { %1307 = vmatpush1.bf16.msra.mxu0 %v4496_v41  ;;  %v4589_v41 = vld [vmem:[#allocation4 + $0x180] ss:$16 sps:$4 sm:$0xff]  }
 0x12c   :  { %1308 = vmatprep.subr.bf16.mxu0 %v4501_v16  ;;  %v4594_v16 = vld [vmem:[#allocation4 + $0x1a4] ss:$16 sps:$4 sm:$0xff]  }
 0x12f   :  { %1309 = vmatpush1.bf16.msra.mxu0 %v4499_v42  ;;  %v4592_v42 = vld [vmem:[#allocation4 + $0x1a0] ss:$16 sps:$4 sm:$0xff]  }
 0x130   :  { %1310 = vmatprep.subr.bf16.mxu0 %v4504_v45 }
 0x133   :  { %1311 = vmatpush1.bf16.msra.mxu0 %v4502_v30 }
 0x134   :  { %1321 = vmatprep.subr.bf16.mxu0 %v4507_v46 }
 0x136   :  { %1313 = vmatmul.mubr.bf16.vlgmr.msra.gmra.mrb[0].mxu0 %v5508_v56  ;;  %v4522_v56 = vld [vmem:[#allocation2 + $0x354] ss:$8 sps:$4 sm:$0xff]  }
 0x137   :  { %1322 = vmatpush1.bf16.msra.mxu0 %v4505_v47  ;;  %1353 = vmatprep.mubr.bf16.mxu0 %v429_v5  ;;  %v4579_v5 = vld [vmem:[#allocation4 + $0x104] ss:$16 sps:$4 sm:$0xff]  }
 0x138   :  { %1323 = vmatprep.subr.bf16.mxu0 %v4510_v48  ;;  %1788 = vmatprep.subr.bf16.mxu1 %v4579_v5  ;;  %v4595_v48 = vld [vmem:[#allocation4 + $0x1c0] ss:$16 sps:$4 sm:$0xff]  }
 0x139   :  { %1789 = vmatpush1.bf16.msra.mxu1 %v4577_v8 }
 0x13a   :  { %1790 = vmatprep.subr.bf16.mxu1 %v4582_v9  ;;  %v4601_v9 = vld [vmem:[#allocation4 + $0x8] ss:$16 sps:$4 sm:$0xff]  }
 0x13b   :  { %1324 = vmatpush1.bf16.msra.mxu0 %v4508_v49  ;;  %v4597_v49 = vld [vmem:[#allocation4 + $0x1c4] ss:$16 sps:$4 sm:$0xff]  }
 0x13c   :  { %1325 = vmatprep.subr.bf16.mxu0 %v4513_v50  ;;  %v4600_v50 = vld [vmem:[#allocation4 + $0x1e4] ss:$16 sps:$4 sm:$0xff]  }
 0x13d   :  { %1791 = vmatpush1.bf16.msra.mxu1 %v4580_v25  ;;  %v4604_v25 = vld [vmem:[#allocation4 + $0x28] ss:$16 sps:$4 sm:$0xff]  }
 0x13e   :  { %1792 = vmatprep.subr.bf16.mxu1 %v4585_v20  ;;  %v4609_v20 = vld [vmem:[#allocation4 + $0x4c] ss:$16 sps:$4 sm:$0xff]  }
 0x13f   :  { %1326 = vmatpush1.bf16.msra.mxu0 %v4511_v12  ;;  %v4598_v12 = vld [vmem:[#allocation4 + $0x1e0] ss:$16 sps:$4 sm:$0xff]  }
 0x140   :  { %1327 = vmatprep.subr.bf16.mxu0 %v4516_v17  ;;  %v4603_v17 = vld [vmem:[#allocation4 + $0xc] ss:$16 sps:$4 sm:$0xff]  }
 0x141   :  { %1793 = vmatpush1.bf16.msra.mxu1 %v4583_v33  ;;  %v4610_v33 = vld [vmem:[#allocation4 + $0x68] ss:$16 sps:$4 sm:$0xff]  }
 0x142   :  { %1794 = vmatprep.subr.bf16.mxu1 %v4588_v36  ;;  %v4615_v36 = vld [vmem:[#allocation4 + $0x8c] ss:$16 sps:$4 sm:$0xff]  }
 0x143   :  { %1328 = vmatpush1.bf16.msra.mxu0 %v4514_v51  ;;  %v4652_v51 = vld [vmem:[#allocation6 + $0x8] ss:$16 sps:$4 sm:$0xff]  }
 0x144   :  { %1329 = vmatprep.subr.bf16.mxu0 %v4519_v52  ;;  %v4654_v52 = vld [vmem:[#allocation6 + $0xc] ss:$16 sps:$4 sm:$0xff]  }
 0x145   :  { %1795 = vmatpush1.bf16.msra.mxu1 %v4586_v39  ;;  %v4616_v39 = vld [vmem:[#allocation4 + $0xa8] ss:$16 sps:$4 sm:$0xff]  }
 0x146   :  { %1796 = vmatprep.subr.bf16.mxu1 %v4591_v18  ;;  %v4621_v18 = vld [vmem:[#allocation4 + $0xcc] ss:$16 sps:$4 sm:$0xff]  }
 0x147   :  { %1330 = vmatpush1.bf16.msra.mxu0 %v4517_v58  ;;  %v4672_v58 = vld [vmem:[#allocation6 + $0x6c] ss:$16 sps:$4 sm:$0xff]  }
 0x148   :  { %1331 = vmatprep.subr.bf16.mxu0 %v4522_v56  ;;  %v4670_v56 = vld [vmem:[#allocation6 + $0x68] ss:$16 sps:$4 sm:$0xff]  }
 0x149   :  { %1797 = vmatpush1.bf16.msra.mxu1 %v4589_v41  ;;  %v4624_v41 = vld [vmem:[#allocation4 + $0xec] ss:$16 sps:$4 sm:$0xff]  }
 0x14a   :  { %1798 = vmatprep.subr.bf16.mxu1 %v4594_v16  ;;  %v4622_v16 = vld [vmem:[#allocation4 + $0xe8] ss:$16 sps:$4 sm:$0xff]  }
 0x14b   :  { %1332 = vmatpush1.bf16.msra.mxu0 %v4520_v60  ;;  %v4684_v60 = vld [vmem:[#allocation6 + $0xac] ss:$16 sps:$4 sm:$0xff]  }
 0x14c   :  { %1333 = vmatprep.subr.bf16.mxu0 %v4525_v26  ;;  %v4682_v26 = vld [vmem:[#allocation6 + $0xa8] ss:$16 sps:$4 sm:$0xff]  }
 0x14d   :  { %1799 = vmatpush1.bf16.msra.mxu1 %v4592_v42  ;;  %v4627_v42 = vld [vmem:[#allocation4 + $0x10c] ss:$16 sps:$4 sm:$0xff]  }
 0x14e   :  { %1800 = vmatprep.subr.bf16.mxu1 %v4597_v49  ;;  %v4636_v49 = vld [vmem:[#allocation4 + $0x16c] ss:$16 sps:$4 sm:$0xff]  }
 0x14f   :  { %1334 = vmatpush1.bf16.msra.mxu0 %v4523_v22  ;;  %v4696_v22 = vld [vmem:[#allocation6 + $0xec] ss:$16 sps:$4 sm:$0xff]  }
 0x150   :  { %1335 = vmatprep.subr.bf16.mxu0 %v4528_v27  ;;  %v4694_v27 = vld [vmem:[#allocation6 + $0xe8] ss:$16 sps:$4 sm:$0xff]  }
 0x151   :  { %1801 = vmatpush1.bf16.msra.mxu1 %v4595_v48  ;;  %v4631_v48 = vld [vmem:[#allocation4 + $0x148] ss:$16 sps:$4 sm:$0xff]  }
 0x152   :  { %1802 = vmatprep.subr.bf16.mxu1 %v4600_v50  ;;  %v4634_v50 = vld [vmem:[#allocation4 + $0x168] ss:$16 sps:$4 sm:$0xff]  }
 0x153   :  { %1336 = vmatpush1.bf16.msra.mxu0 %v4526_v57  ;;  %v4708_v57 = vld [vmem:[#allocation6 + $0x12c] ss:$16 sps:$4 sm:$0xff]  }
 0x154   :  { %1337 = vmatprep.subr.bf16.mxu0 %v4531_v63  ;;  %v4706_v63 = vld [vmem:[#allocation6 + $0x128] ss:$16 sps:$4 sm:$0xff]  }
 0x155   :  { %1803 = vmatpush1.bf16.msra.mxu1 %v4598_v12  ;;  %v4639_v12 = vld [vmem:[#allocation4 + $0x18c] ss:$16 sps:$4 sm:$0xff]  }
 0x156   :  { %1813 = vmatprep.subr.bf16.mxu1 %v4603_v17  ;;  %v4637_v17 = vld [vmem:[#allocation4 + $0x188] ss:$16 sps:$4 sm:$0xff]  }
 0x157   :  { %1338 = vmatpush1.bf16.msra.mxu0 %v4529_v21  ;;  %v4720_v21 = vld [vmem:[#allocation6 + $0x16c] ss:$16 sps:$4 sm:$0xff]  }
 0x158   :  { %1339 = vmatprep.subr.bf16.mxu0 %v4534_v43  ;;  %v4718_v43 = vld [vmem:[#allocation6 + $0x168] ss:$16 sps:$4 sm:$0xff]  }
 0x15b   :  { %1340 = vmatpush1.bf16.msra.mxu0 %v4532_v23  ;;  %v4732_v23 = vld [vmem:[#allocation6 + $0x1ac] ss:$16 sps:$4 sm:$0xff]  }
 0x15c   :  { %1341 = vmatprep.subr.bf16.mxu0 %v4537_v61  ;;  %v4730_v61 = vld [vmem:[#allocation6 + $0x1a8] ss:$16 sps:$4 sm:$0xff]  }
 0x15f   :  { %1342 = vmatpush1.bf16.msra.mxu0 %v4535_v2 }
 0x160   :  { %1343 = vmatprep.subr.bf16.mxu0 %v4540_v3 }
 0x163   :  { %1344 = vmatpush1.bf16.msra.mxu0 %v4538_v6 }
 0x164   :  { %1345 = vmatprep.subr.bf16.mxu0 %v4543_v7 }
 0x167   :  { %1346 = vmatpush1.bf16.msra.mxu0 %v4541_v14 }
 0x168   :  { %1347 = vmatprep.subr.bf16.mxu0 %v4546_v24  ;;  %v4606_v24 = vld [vmem:[#allocation4 + $0x2c] ss:$16 sps:$4 sm:$0xff]  }
 0x16b   :  { %1348 = vmatpush1.bf16.msra.mxu0 %v4544_v28  ;;  %v4607_v28 = vld [vmem:[#allocation4 + $0x48] ss:$16 sps:$4 sm:$0xff]  }
 0x16c   :  { %1349 = vmatprep.subr.bf16.mxu0 %v4549_v32  ;;  %v4612_v32 = vld [vmem:[#allocation4 + $0x6c] ss:$16 sps:$4 sm:$0xff]  }
 0x16f   :  { %1350 = vmatpush1.bf16.msra.mxu0 %v4547_v13  ;;  %v4613_v13 = vld [vmem:[#allocation4 + $0x88] ss:$16 sps:$4 sm:$0xff]  }
 0x170   :  { %1351 = vmatprep.subr.bf16.mxu0 %v4552_v37  ;;  %v4618_v37 = vld [vmem:[#allocation4 + $0xac] ss:$16 sps:$4 sm:$0xff]  }
 0x173   :  { %1352 = vmatpush1.bf16.msra.mxu0 %v4550_v40  ;;  %v4619_v40 = vld [vmem:[#allocation4 + $0xc8] ss:$16 sps:$4 sm:$0xff]  }
 0x174   :  { %2734 = vmatprep.subr.bf16.mxu0 %v4654_v52  ;;  %v4640_v52 = vld [vmem:[#allocation4 + $0x1a8] ss:$16 sps:$4 sm:$0xff]  }
 0x176   :  { %1354 = vmatmul.mubr.bf16.vlgmr.msra.gmra.mrb[0].mxu0 %v5530_v31  ;;  %v4660_v31 = vld [vmem:[#allocation6 + $0x2c] ss:$16 sps:$4 sm:$0xff]  }
 0x177   :  { %2735 = vmatpush1.bf16.msra.mxu0 %v4652_v51  ;;  %v4642_v51 = vld [vmem:[#allocation4 + $0x1ac] ss:$16 sps:$4 sm:$0xff]  }
 0x178   :  { %2736 = vmatprep.subr.bf16.mxu0 %v4660_v31  ;;  %v4645_v31 = vld [vmem:[#allocation4 + $0x1cc] ss:$16 sps:$4 sm:$0xff]  }
 0x17b   :  { %2737 = vmatpush1.bf16.msra.mxu0 %v4658_v53  ;;  %v4643_v53 = vld [vmem:[#allocation4 + $0x1c8] ss:$16 sps:$4 sm:$0xff]  }
 0x17c   :  { %2738 = vmatprep.subr.bf16.mxu0 %v4666_v54  ;;  %v4648_v54 = vld [vmem:[#allocation4 + $0x1ec] ss:$16 sps:$4 sm:$0xff]  }
 0x17f   :  { %2739 = vmatpush1.bf16.msra.mxu0 %v4664_v55  ;;  %v4646_v55 = vld [vmem:[#allocation4 + $0x1e8] ss:$16 sps:$4 sm:$0xff]  }
 0x180   :  { %2740 = vmatprep.subr.bf16.mxu0 %v4672_v58  ;;  %v4651_v58 = vld [vmem:[#allocation6 + $0x4] ss:$16 sps:$4 sm:$0xff]  }
 0x183   :  { %2741 = vmatpush1.bf16.msra.mxu0 %v4670_v56  ;;  %v4649_v56 = vld [vmem:[#allocation6] ss:$16 sps:$4 sm:$0xff]  }
 0x184   :  { %2742 = vmatprep.subr.bf16.mxu0 %v4678_v11  ;;  %v4657_v11 = vld [vmem:[#allocation6 + $0x24] ss:$16 sps:$4 sm:$0xff]  }
 0x187   :  { %2743 = vmatpush1.bf16.msra.mxu0 %v4676_v59  ;;  %v4655_v59 = vld [vmem:[#allocation6 + $0x20] ss:$16 sps:$4 sm:$0xff]  }
 0x188   :  { %2744 = vmatprep.subr.bf16.mxu0 %v4684_v60  ;;  %v4663_v60 = vld [vmem:[#allocation6 + $0x44] ss:$16 sps:$4 sm:$0xff]  }
 0x18b   :  { %2745 = vmatpush1.bf16.msra.mxu0 %v4682_v26  ;;  %v4661_v26 = vld [vmem:[#allocation6 + $0x40] ss:$16 sps:$4 sm:$0xff]  }
 0x18c   :  { %2746 = vmatprep.subr.bf16.mxu0 %v4690_v62  ;;  %v4669_v62 = vld [vmem:[#allocation6 + $0x64] ss:$16 sps:$4 sm:$0xff]  }
 0x18f   :  { %2747 = vmatpush1.bf16.msra.mxu0 %v4688_v19  ;;  %v4667_v19 = vld [vmem:[#allocation6 + $0x60] ss:$16 sps:$4 sm:$0xff]  }
 0x190   :  { %2748 = vmatprep.subr.bf16.mxu0 %v4696_v22  ;;  %v4675_v22 = vld [vmem:[#allocation6 + $0x84] ss:$16 sps:$4 sm:$0xff]  }
 0x193   :  { %2749 = vmatpush1.bf16.msra.mxu0 %v4694_v27  ;;  %v4673_v27 = vld [vmem:[#allocation6 + $0x80] ss:$16 sps:$4 sm:$0xff]  }
 0x194   :  { %2750 = vmatprep.subr.bf16.mxu0 %v4702_v15  ;;  %v4681_v15 = vld [vmem:[#allocation6 + $0xa4] ss:$16 sps:$4 sm:$0xff]  }
 0x197   :  { %2751 = vmatpush1.bf16.msra.mxu0 %v4700_v35  ;;  %v4679_v35 = vld [vmem:[#allocation6 + $0xa0] ss:$16 sps:$4 sm:$0xff]  }
 0x198   :  { %2752 = vmatprep.subr.bf16.mxu0 %v4708_v57  ;;  %v4687_v57 = vld [vmem:[#allocation6 + $0xc4] ss:$16 sps:$4 sm:$0xff]  }
 0x19b   :  { %2753 = vmatpush1.bf16.msra.mxu0 %v4706_v63  ;;  %v4685_v63 = vld [vmem:[#allocation6 + $0xc0] ss:$16 sps:$4 sm:$0xff]  }
 0x19c   :  { %2754 = vmatprep.subr.bf16.mxu0 %v4714_v29  ;;  %v4693_v29 = vld [vmem:[#allocation6 + $0xe4] ss:$16 sps:$4 sm:$0xff]  }
 0x19f   :  { %2755 = vmatpush1.bf16.msra.mxu0 %v4712_v0  ;;  %v4736_v0 = vld [vmem:[#allocation6 + $0x1c8] ss:$16 sps:$4 sm:$0xff]  }
 0x1a0   :  { %2756 = vmatprep.subr.bf16.mxu0 %v4720_v21  ;;  %v4691_v21 = vld [vmem:[#allocation6 + $0xe0] ss:$16 sps:$4 sm:$0xff]  }
 0x1a3   :  { %2757 = vmatpush1.bf16.msra.mxu0 %v4718_v43  ;;  %v4738_v43 = vld [vmem:[#allocation6 + $0x1cc] ss:$16 sps:$4 sm:$0xff]  }
 0x1a4   :  { %2758 = vmatprep.subr.bf16.mxu0 %v4726_v44  ;;  %v4699_v44 = vld [vmem:[#allocation6 + $0x104] ss:$16 sps:$4 sm:$0xff]  }
 0x1a7   :  { %2759 = vmatpush1.bf16.msra.mxu0 %v4724_v1  ;;  %v4744_v1 = vld [vmem:[#allocation6 + $0x1ec] ss:$16 sps:$4 sm:$0xff]  }
 0x1a8   :  { %2760 = vmatprep.subr.bf16.mxu0 %v4732_v23  ;;  %v4742_v23 = vld [vmem:[#allocation6 + $0x1e8] ss:$16 sps:$4 sm:$0xff]  }
 0x1ab   :  { %2761 = vmatpush1.bf16.msra.mxu0 %v4730_v61  ;;  %v4697_v61 = vld [vmem:[#allocation6 + $0x100] ss:$16 sps:$4 sm:$0xff]  }
 0x1ac   :  { %2762 = vmatprep.subr.bf16.mxu0 %v4738_v43  ;;  %v4792_v43 = vld [vmem:[#allocation6 + $0x2ec] ss:$16 sps:$4 sm:$0xff]  }
 0x1af   :  { %2763 = vmatpush1.bf16.msra.mxu0 %v4736_v0  ;;  %v4784_v0 = vld [vmem:[#allocation6 + $0x2c8] ss:$16 sps:$4 sm:$0xff]  }
 0x1b0   :  { %2764 = vmatprep.subr.bf16.mxu0 %v4744_v1  ;;  %v4790_v1 = vld [vmem:[#allocation6 + $0x2e8] ss:$16 sps:$4 sm:$0xff]  }
 0x1b3   :  { %2765 = vmatpush1.bf16.msra.mxu0 %v4742_v23  ;;  %v4795_v23 = vld [vmem:[#allocation6 + $0x304] ss:$16 sps:$4 sm:$0xff]  }
 0x1be   :  { %v5534_v45 = vpop.f32.mrb[0].mxu1 }
 0x1bf   :  { %v5536_v30 = vpop.f32.mrb[1].mxu1 }
 0x1c0   :  { %v1236_v46 = vpop.f32.mrb[2].mxu1 }
 0x1c1   :  { %v1237_v47 = vpop.f32.mrb[3].mxu1  ;;  %v4628_v46 = vld [vmem:[#allocation4 + $0x128] ss:$16 sps:$4 sm:$0xff]  }
 0x1c2   :  { %v4633_v47 = vld [vmem:[#allocation4 + $0x14c] ss:$16 sps:$4 sm:$0xff]  }
 0x249   :  { %v1355_v34 = vpop.f32.mrb[0].mxu0 }
 0x24a   :  { %v4301_v38 = vadd.f32 %v1355_v34, %v5534_v45  ;;  %v1357_v2 = vpop.f32.mrb[1].mxu0  ;;  %v4625_v45 = vld [vmem:[#allocation4 + $0x108] ss:$16 sps:$4 sm:$0xff]   ;;  %v4750_v34 = vld [vmem:[#allocation6 + $0x20c] ss:$16 sps:$4 sm:$0xff]  }
 0x24b   :  { %v4302_v3 = vadd.f32 %v1357_v2, %v5536_v30  ;;  %v1359_v4 = vpop.f32.mrb[2].mxu0  ;;  %v4630_v30 = vld [vmem:[#allocation4 + $0x12c] ss:$16 sps:$4 sm:$0xff]   ;;  %v4703_v2 = vld [vmem:[#allocation6 + $0x120] ss:$16 sps:$4 sm:$0xff]   ;;  %2775 = vmatprep.subr.bf16.mxu0 %v4750_v34 }
 0x24c   :  { %v1362_v5 = vmul.f32 0.125, %v4301_v38  ;;  %v1360_v6 = vpop.f32.mrb[3].mxu0  ;;  %v4705_v38 = vld [vmem:[#allocation6 + $0x124] ss:$16 sps:$4 sm:$0xff]   ;;  %v4709_v4 = vld [vmem:[#allocation6 + $0x140] ss:$16 sps:$4 sm:$0xff]  }
 0x24d   :  { %v1363_v7 = vmul.f32 0.125, %v4302_v3  ;;  %v4711_v3 = vld [vmem:[#allocation6 + $0x144] ss:$16 sps:$4 sm:$0xff]   ;;  %v4715_v6 = vld [vmem:[#allocation6 + $0x160] ss:$16 sps:$4 sm:$0xff]  }
 0x24e   :  { %v5540_v14 = vpack.c.bf16 %v1362_v5, %v1362_v5  ;;  %v4717_v5 = vld [vmem:[#allocation6 + $0x164] ss:$16 sps:$4 sm:$0xff]   ;;  %v4793_v34 = vld [vmem:[#allocation6 + $0x300] ss:$16 sps:$4 sm:$0xff]  }
 0x24f   :  { %v1365_v8 = vpack.c.bf16 %v1363_v7, %v1363_v7  ;;  %v4723_v7 = vld [vmem:[#allocation6 + $0x184] ss:$16 sps:$4 sm:$0xff]  }
 0x251   :  { %1804 = vmatprep.mubr.bf16.mxu1 %v1365_v8 }
 0x252   :  { %1805 = vmatmul.mubr.bf16.vlgmr.msra.gmra.mrb[4].mxu1 %v5540_v14 }
 0x253   :  { %1814 = vmatpush1.bf16.msra.mxu1 %v4601_v9  ;;  %1845 = vmatprep.mubr.bf16.mxu1 %v1365_v8  ;;  %v4721_v8 = vld [vmem:[#allocation6 + $0x180] ss:$16 sps:$4 sm:$0xff]   ;;  %v4729_v9 = vld [vmem:[#allocation6 + $0x1a4] ss:$16 sps:$4 sm:$0xff]  }
 0x254   :  { %1815 = vmatprep.subr.bf16.mxu1 %v4606_v24  ;;  %v4735_v24 = vld [vmem:[#allocation6 + $0x1c4] ss:$16 sps:$4 sm:$0xff]  }
 0x257   :  { %1816 = vmatpush1.bf16.msra.mxu1 %v4604_v25  ;;  %v4733_v25 = vld [vmem:[#allocation6 + $0x1c0] ss:$16 sps:$4 sm:$0xff]  }
 0x258   :  { %1817 = vmatprep.subr.bf16.mxu1 %v4609_v20  ;;  %v4741_v20 = vld [vmem:[#allocation6 + $0x1e4] ss:$16 sps:$4 sm:$0xff]  }
 0x25b   :  { %1818 = vmatpush1.bf16.msra.mxu1 %v4607_v28  ;;  %v4739_v28 = vld [vmem:[#allocation6 + $0x1e0] ss:$16 sps:$4 sm:$0xff]  }
 0x25c   :  { %1819 = vmatprep.subr.bf16.mxu1 %v4612_v32  ;;  %v4747_v32 = vld [vmem:[#allocation6 + $0x204] ss:$16 sps:$4 sm:$0xff]  }
 0x25f   :  { %1820 = vmatpush1.bf16.msra.mxu1 %v4610_v33  ;;  %v5545_v33 = vshrl.u32 %v85_v10, 7 }
 0x260   :  { %1821 = vmatprep.subr.bf16.mxu1 %v4615_v36 }
 0x261   :  { %v5548_v36 = vsub.s32 0, %v5545_v33 }
 0x263   :  { %1822 = vmatpush1.bf16.msra.mxu1 %v4613_v13  ;;  %v5553_v13 = vld [vmem:[%s5610_s3] sm:$0xf] }
 0x264   :  { %1823 = vmatprep.subr.bf16.mxu1 %v4618_v37  ;;  %v5556_v37 = vsub.s32 1, %v5545_v33 }
 0x267   :  { %1824 = vmatpush1.bf16.msra.mxu1 %v4616_v39  ;;  %v1435_v39 = vrot.slane %v5553_v13, %v5548_v36 }
 0x268   :  { %1825 = vmatprep.subr.bf16.mxu1 %v4621_v18  ;;  %v1439_v18 = vrot.slane %v5553_v13, %v5556_v37 }
 0x26b   :  { %1826 = vmatpush1.bf16.msra.mxu1 %v4619_v40 }
 0x26c   :  { %1827 = vmatprep.subr.bf16.mxu1 %v4624_v41 }
 0x26f   :  { %1828 = vmatpush1.bf16.msra.mxu1 %v4622_v16 }
 0x270   :  { %1829 = vmatprep.subr.bf16.mxu1 %v4627_v42 }
 0x273   :  { %1830 = vmatpush1.bf16.msra.mxu1 %v4625_v45 }
 0x274   :  { %1831 = vmatprep.subr.bf16.mxu1 %v4630_v30 }
 0x277   :  { %1832 = vmatpush1.bf16.msra.mxu1 %v4628_v46 }
 0x278   :  { %1833 = vmatprep.subr.bf16.mxu1 %v4633_v47 }
 0x27b   :  { %1834 = vmatpush1.bf16.msra.mxu1 %v4631_v48  ;;  %v4745_v48 = vld [vmem:[#allocation6 + $0x200] ss:$16 sps:$4 sm:$0xff]  }
 0x27c   :  { %1835 = vmatprep.subr.bf16.mxu1 %v4636_v49  ;;  %v4748_v49 = vld [vmem:[#allocation6 + $0x208] ss:$16 sps:$4 sm:$0xff]  }
 0x27f   :  { %1836 = vmatpush1.bf16.msra.mxu1 %v4634_v50 }
 0x280   :  { %1837 = vmatprep.subr.bf16.mxu1 %v4639_v12  ;;  %v4753_v12 = vld [vmem:[#allocation6 + $0x224] ss:$16 sps:$4 sm:$0xff]  }
 0x283   :  { %1838 = vmatpush1.bf16.msra.mxu1 %v4637_v17  ;;  %v4756_v17 = vld [vmem:[#allocation6 + $0x22c] ss:$16 sps:$4 sm:$0xff]  }
 0x284   :  { %1839 = vmatprep.subr.bf16.mxu1 %v4642_v51  ;;  %v4751_v51 = vld [vmem:[#allocation6 + $0x220] ss:$16 sps:$4 sm:$0xff]  }
 0x287   :  { %1840 = vmatpush1.bf16.msra.mxu1 %v4640_v52  ;;  %v4754_v52 = vld [vmem:[#allocation6 + $0x228] ss:$16 sps:$4 sm:$0xff]  }
 0x288   :  { %1841 = vmatprep.subr.bf16.mxu1 %v4645_v31  ;;  %v4759_v31 = vld [vmem:[#allocation6 + $0x244] ss:$16 sps:$4 sm:$0xff]  }
 0x28b   :  { %1842 = vmatpush1.bf16.msra.mxu1 %v4643_v53  ;;  %v4762_v53 = vld [vmem:[#allocation6 + $0x24c] ss:$16 sps:$4 sm:$0xff]  }
 0x28c   :  { %1843 = vmatprep.subr.bf16.mxu1 %v4648_v54  ;;  %v4757_v54 = vld [vmem:[#allocation6 + $0x240] ss:$16 sps:$4 sm:$0xff]  }
 0x28f   :  { %1844 = vmatpush1.bf16.msra.mxu1 %v4646_v55  ;;  %v4760_v55 = vld [vmem:[#allocation6 + $0x248] ss:$16 sps:$4 sm:$0xff]  }
 0x290   :  { %2652 = vmatprep.subr.bf16.mxu1 %v4651_v58  ;;  %v4765_v58 = vld [vmem:[#allocation6 + $0x264] ss:$16 sps:$4 sm:$0xff]  }
 0x292   :  { %1846 = vmatmul.mubr.bf16.vlgmr.msra.gmra.mrb[8].mxu1 %v5540_v14  ;;  %v4727_v14 = vld [vmem:[#allocation6 + $0x1a0] ss:$16 sps:$4 sm:$0xff]  }
 0x293   :  { %2653 = vmatpush1.bf16.msra.mxu1 %v4649_v56  ;;  %v4768_v56 = vld [vmem:[#allocation6 + $0x26c] ss:$16 sps:$4 sm:$0xff]  }
 0x294   :  { %2654 = vmatprep.subr.bf16.mxu1 %v4657_v11  ;;  %v4763_v11 = vld [vmem:[#allocation6 + $0x260] ss:$16 sps:$4 sm:$0xff]  }
 0x297   :  { %2655 = vmatpush1.bf16.msra.mxu1 %v4655_v59  ;;  %v4766_v59 = vld [vmem:[#allocation6 + $0x268] ss:$16 sps:$4 sm:$0xff]  }
 0x298   :  { %2656 = vmatprep.subr.bf16.mxu1 %v4663_v60  ;;  %v4771_v60 = vld [vmem:[#allocation6 + $0x284] ss:$16 sps:$4 sm:$0xff]  }
 0x29b   :  { %2657 = vmatpush1.bf16.msra.mxu1 %v4661_v26  ;;  %v4774_v26 = vld [vmem:[#allocation6 + $0x28c] ss:$16 sps:$4 sm:$0xff]  }
 0x29c   :  { %2658 = vmatprep.subr.bf16.mxu1 %v4669_v62  ;;  %v4769_v62 = vld [vmem:[#allocation6 + $0x280] ss:$16 sps:$4 sm:$0xff]  }
 0x29f   :  { %2659 = vmatpush1.bf16.msra.mxu1 %v4667_v19  ;;  %v4772_v19 = vld [vmem:[#allocation6 + $0x288] ss:$16 sps:$4 sm:$0xff]  }
 0x2a0   :  { %2660 = vmatprep.subr.bf16.mxu1 %v4675_v22  ;;  %v4777_v22 = vld [vmem:[#allocation6 + $0x2a4] ss:$16 sps:$4 sm:$0xff]  }
 0x2a3   :  { %2661 = vmatpush1.bf16.msra.mxu1 %v4673_v27  ;;  %v4780_v27 = vld [vmem:[#allocation6 + $0x2ac] ss:$16 sps:$4 sm:$0xff]  }
 0x2a4   :  { %2662 = vmatprep.subr.bf16.mxu1 %v4681_v15  ;;  %v4775_v15 = vld [vmem:[#allocation6 + $0x2a0] ss:$16 sps:$4 sm:$0xff]  }
 0x2a7   :  { %2663 = vmatpush1.bf16.msra.mxu1 %v4679_v35  ;;  %v4778_v35 = vld [vmem:[#allocation6 + $0x2a8] ss:$16 sps:$4 sm:$0xff]  }
 0x2a8   :  { %2664 = vmatprep.subr.bf16.mxu1 %v4687_v57  ;;  %v4783_v57 = vld [vmem:[#allocation6 + $0x2c4] ss:$16 sps:$4 sm:$0xff]  }
 0x2ab   :  { %2665 = vmatpush1.bf16.msra.mxu1 %v4685_v63  ;;  %v4786_v63 = vld [vmem:[#allocation6 + $0x2cc] ss:$16 sps:$4 sm:$0xff]  }
 0x2ac   :  { %2666 = vmatprep.subr.bf16.mxu1 %v4693_v29  ;;  %v4781_v29 = vld [vmem:[#allocation6 + $0x2c0] ss:$16 sps:$4 sm:$0xff]  }
 0x2af   :  { %2667 = vmatpush1.bf16.msra.mxu1 %v4691_v21  ;;  %v4789_v21 = vld [vmem:[#allocation6 + $0x2e4] ss:$16 sps:$4 sm:$0xff]  }
 0x2b0   :  { %2668 = vmatprep.subr.bf16.mxu1 %v4699_v44  ;;  %v4787_v44 = vld [vmem:[#allocation6 + $0x2e0] ss:$16 sps:$4 sm:$0xff]  }
 0x2b3   :  { %2669 = vmatpush1.bf16.msra.mxu1 %v4697_v61  ;;  %v4798_v61 = vld [vmem:[#allocation6 + $0x30c] ss:$16 sps:$4 sm:$0xff]  }
 0x2b4   :  { %2670 = vmatprep.subr.bf16.mxu1 %v4705_v38  ;;  %v4796_v38 = vld [vmem:[#allocation6 + $0x308] ss:$16 sps:$4 sm:$0xff]  }
 0x2b7   :  { %2671 = vmatpush1.bf16.msra.mxu1 %v4703_v2  ;;  %v4801_v2 = vld [vmem:[#allocation6 + $0x324] ss:$16 sps:$4 sm:$0xff]  }
 0x2b8   :  { %2672 = vmatprep.subr.bf16.mxu1 %v4711_v3  ;;  %v4804_v3 = vld [vmem:[#allocation6 + $0x32c] ss:$16 sps:$4 sm:$0xff]  }
 0x2bb   :  { %2673 = vmatpush1.bf16.msra.mxu1 %v4709_v4  ;;  %v4799_v4 = vld [vmem:[#allocation6 + $0x320] ss:$16 sps:$4 sm:$0xff]  }
 0x2bc   :  { %2674 = vmatprep.subr.bf16.mxu1 %v4717_v5  ;;  %v4802_v5 = vld [vmem:[#allocation6 + $0x328] ss:$16 sps:$4 sm:$0xff]  }
 0x2bf   :  { %2675 = vmatpush1.bf16.msra.mxu1 %v4715_v6  ;;  %v4807_v6 = vld [vmem:[#allocation6 + $0x344] ss:$16 sps:$4 sm:$0xff]  }
 0x2c0   :  { %2676 = vmatprep.subr.bf16.mxu1 %v4723_v7  ;;  %v4810_v7 = vld [vmem:[#allocation6 + $0x34c] ss:$16 sps:$4 sm:$0xff]  }
 0x2c3   :  { %2677 = vmatpush1.bf16.msra.mxu1 %v4721_v8  ;;  %v4805_v8 = vld [vmem:[#allocation6 + $0x340] ss:$16 sps:$4 sm:$0xff]  }
 0x2c4   :  { %2678 = vmatprep.subr.bf16.mxu1 %v4729_v9  ;;  %v4808_v9 = vld [vmem:[#allocation6 + $0x348] ss:$16 sps:$4 sm:$0xff]  }
 0x2c7   :  { %2679 = vmatpush1.bf16.msra.mxu1 %v4727_v14  ;;  %v4813_v14 = vld [vmem:[#allocation6 + $0x364] ss:$16 sps:$4 sm:$0xff]  }
 0x2c8   :  { %2680 = vmatprep.subr.bf16.mxu1 %v4735_v24  ;;  %v4816_v24 = vld [vmem:[#allocation6 + $0x36c] ss:$16 sps:$4 sm:$0xff]  }
 0x2cb   :  { %2681 = vmatpush1.bf16.msra.mxu1 %v4733_v25  ;;  %v4811_v25 = vld [vmem:[#allocation6 + $0x360] ss:$16 sps:$4 sm:$0xff]  }
 0x2cc   :  { %2682 = vmatprep.subr.bf16.mxu1 %v4741_v20  ;;  %v4814_v20 = vld [vmem:[#allocation6 + $0x368] ss:$16 sps:$4 sm:$0xff]  }
 0x2cf   :  { %2683 = vmatpush1.bf16.msra.mxu1 %v4739_v28  ;;  %v4819_v28 = vld [vmem:[#allocation6 + $0x384] ss:$16 sps:$4 sm:$0xff]  }
 0x2d0   :  { %2693 = vmatprep.subr.bf16.mxu1 %v4747_v32  ;;  %v4822_v32 = vld [vmem:[#allocation6 + $0x38c] ss:$16 sps:$4 sm:$0xff]  }
 0x325   :  { %v1806_v40 = vpop.f32.mrb[4].mxu1 }
 0x326   :  { %v1807_v10 = vadd.f32 %v1806_v40, %v1435_v39  ;;  %v1808_v41 = vpop.f32.mrb[5].mxu1  ;;  %v4817_v39 = vld [vmem:[#allocation6 + $0x380] ss:$16 sps:$4 sm:$0xff]   ;;  %v4825_v40 = vld [vmem:[#allocation6 + $0x3a4] ss:$16 sps:$4 sm:$0xff]  }
 0x327   :  { %v1809_v16 = vadd.f32 %v1808_v41, %v1439_v18  ;;  %v1810_v42 = vpop.f32.mrb[6].mxu1  ;;  %v4820_v18 = vld [vmem:[#allocation6 + $0x388] ss:$16 sps:$4 sm:$0xff]   ;;  %v5563_v41 = vsub.s32 2, %v5545_v33 }
 0x328   :  { %v1854_v45 = vmax.f32 %v1807_v10, 0.0  ;;  %v1811_v30 = vpop.f32.mrb[7].mxu1  ;;  %v4828_v10 = vld [vmem:[#allocation6 + $0x3ac] ss:$16 sps:$4 sm:$0xff]   ;;  %v4826_v42 = vld [vmem:[#allocation6 + $0x3a8] ss:$16 sps:$4 sm:$0xff]  }
 0x329   :  { %v1855_v46 = vmax.f32 %v1809_v16, 0.0  ;;  %v4823_v16 = vld [vmem:[#allocation6 + $0x3a0] ss:$16 sps:$4 sm:$0xff]   ;;  %v4831_v30 = vld [vmem:[#allocation6 + $0x3c4] ss:$16 sps:$4 sm:$0xff]  }
 0x32a   :  { %v1858_v50 = vpack.c.bf16 %v1854_v45, %v1854_v45  ;;  %v5566_v45 = vsub.s32 3, %v5545_v33 }
 0x32b   :  { %v1859_v47 = vpack.c.bf16 %v1855_v46, %v1855_v46  ;;  %v4834_v46 = vld [vmem:[#allocation6 + $0x3cc] ss:$16 sps:$4 sm:$0xff]  }
 0x32d   :  { %2684 = vmatprep.mubr.bf16.mxu1 %v1859_v47  ;;  %2766 = vmatprep.mubr.bf16.mxu0 %v1859_v47  ;;  %v1443_v47 = vrot.slane %v5553_v13, %v5563_v41 }
 0x32e   :  { %2685 = vmatmul.mubr.bf16.vlgmr.msra.gmra.mrb[12].mxu1 %v1858_v50  ;;  %2767 = vmatmul.mubr.bf16.vlgmr.msra.gmra.mrb[4].mxu0 %v1858_v50  ;;  %v4832_v50 = vld [vmem:[#allocation6 + $0x3c8] ss:$16 sps:$4 sm:$0xff]  }
 0x32f   :  { %2694 = vmatpush1.bf16.msra.mxu1 %v4745_v48  ;;  %2776 = vmatpush1.bf16.msra.mxu0 %v4748_v49  ;;  %v1447_v48 = vrot.slane %v5553_v13, %v5566_v45  ;;  %v4829_v49 = vld [vmem:[#allocation6 + $0x3c0] ss:$16 sps:$4 sm:$0xff]   ;;  %v4843_v13 = vld [vmem:[#allocation7 + $0x4] ss:$16 sps:$4 sm:$0xff]  }
 0x330   :  { %2695 = vmatprep.subr.bf16.mxu1 %v4753_v12  ;;  %2777 = vmatprep.subr.bf16.mxu0 %v4756_v17  ;;  %v4837_v12 = vld [vmem:[#allocation6 + $0x3e4] ss:$16 sps:$4 sm:$0xff]   ;;  %v4840_v17 = vld [vmem:[#allocation6 + $0x3ec] ss:$16 sps:$4 sm:$0xff]  }
 0x333   :  { %2696 = vmatpush1.bf16.msra.mxu1 %v4751_v51  ;;  %2778 = vmatpush1.bf16.msra.mxu0 %v4754_v52 }
 0x334   :  { %2697 = vmatprep.subr.bf16.mxu1 %v4759_v31  ;;  %2779 = vmatprep.subr.bf16.mxu0 %v4762_v53 }
 0x337   :  { %2698 = vmatpush1.bf16.msra.mxu1 %v4757_v54  ;;  %2780 = vmatpush1.bf16.msra.mxu0 %v4760_v55  ;;  %v4835_v54 = vld [vmem:[#allocation6 + $0x3e0] ss:$16 sps:$4 sm:$0xff]   ;;  %v4838_v55 = vld [vmem:[#allocation6 + $0x3e8] ss:$16 sps:$4 sm:$0xff]  }
 0x338   :  { %2699 = vmatprep.subr.bf16.mxu1 %v4765_v58  ;;  %2781 = vmatprep.subr.bf16.mxu0 %v4768_v56 }
 0x33b   :  { %2700 = vmatpush1.bf16.msra.mxu1 %v4763_v11  ;;  %2782 = vmatpush1.bf16.msra.mxu0 %v4766_v59  ;;  %v4846_v11 = vld [vmem:[#allocation7 + $0xc] ss:$16 sps:$4 sm:$0xff]  }
 0x33c   :  { %2701 = vmatprep.subr.bf16.mxu1 %v4771_v60  ;;  %2783 = vmatprep.subr.bf16.mxu0 %v4774_v26  ;;  %v4841_v26 = vld [vmem:[#allocation7] ss:$16 sps:$4 sm:$0xff]  }
 0x33f   :  { %2702 = vmatpush1.bf16.msra.mxu1 %v4769_v62  ;;  %2784 = vmatpush1.bf16.msra.mxu0 %v4772_v19  ;;  %v4844_v62 = vld [vmem:[#allocation7 + $0x8] ss:$16 sps:$4 sm:$0xff]  }
 0x340   :  { %2703 = vmatprep.subr.bf16.mxu1 %v4777_v22  ;;  %2785 = vmatprep.subr.bf16.mxu0 %v4780_v27  ;;  %v4849_v22 = vld [vmem:[#allocation7 + $0x24] ss:$16 sps:$4 sm:$0xff]   ;;  %v4852_v27 = vld [vmem:[#allocation7 + $0x2c] ss:$16 sps:$4 sm:$0xff]  }
 0x343   :  { %2704 = vmatpush1.bf16.msra.mxu1 %v4775_v15  ;;  %2786 = vmatpush1.bf16.msra.mxu0 %v4778_v35  ;;  %v4847_v15 = vld [vmem:[#allocation7 + $0x20] ss:$16 sps:$4 sm:$0xff]   ;;  %v4850_v35 = vld [vmem:[#allocation7 + $0x28] ss:$16 sps:$4 sm:$0xff]  }
 0x344   :  { %2705 = vmatprep.subr.bf16.mxu1 %v4783_v57  ;;  %2787 = vmatprep.subr.bf16.mxu0 %v4786_v63  ;;  %v4855_v57 = vld [vmem:[#allocation7 + $0x44] ss:$16 sps:$4 sm:$0xff]   ;;  %v4858_v63 = vld [vmem:[#allocation7 + $0x4c] ss:$16 sps:$4 sm:$0xff]  }
 0x347   :  { %2706 = vmatpush1.bf16.msra.mxu1 %v4781_v29  ;;  %2788 = vmatpush1.bf16.msra.mxu0 %v4784_v0  ;;  %v4853_v29 = vld [vmem:[#allocation7 + $0x40] ss:$16 sps:$4 sm:$0xff]   ;;  %v4856_v0 = vld [vmem:[#allocation7 + $0x48] ss:$16 sps:$4 sm:$0xff]  }
 0x348   :  { %2707 = vmatprep.subr.bf16.mxu1 %v4789_v21  ;;  %2789 = vmatprep.subr.bf16.mxu0 %v4792_v43  ;;  %v4861_v21 = vld [vmem:[#allocation7 + $0x64] ss:$16 sps:$4 sm:$0xff]   ;;  %v4864_v43 = vld [vmem:[#allocation7 + $0x6c] ss:$16 sps:$4 sm:$0xff]  }
 0x34b   :  { %2708 = vmatpush1.bf16.msra.mxu1 %v4787_v44  ;;  %2790 = vmatpush1.bf16.msra.mxu0 %v4790_v1  ;;  %v4859_v44 = vld [vmem:[#allocation7 + $0x60] ss:$16 sps:$4 sm:$0xff]   ;;  %v4862_v1 = vld [vmem:[#allocation7 + $0x68] ss:$16 sps:$4 sm:$0xff]  }
 0x34c   :  { %2709 = vmatprep.subr.bf16.mxu1 %v4795_v23  ;;  %2791 = vmatprep.subr.bf16.mxu0 %v4798_v61  ;;  %v4867_v23 = vld [vmem:[#allocation7 + $0x84] ss:$16 sps:$4 sm:$0xff]   ;;  %v4870_v61 = vld [vmem:[#allocation7 + $0x8c] ss:$16 sps:$4 sm:$0xff]  }
 0x34f   :  { %2710 = vmatpush1.bf16.msra.mxu1 %v4793_v34  ;;  %2792 = vmatpush1.bf16.msra.mxu0 %v4796_v38  ;;  %v4865_v34 = vld [vmem:[#allocation7 + $0x80] ss:$16 sps:$4 sm:$0xff]   ;;  %v4868_v38 = vld [vmem:[#allocation7 + $0x88] ss:$16 sps:$4 sm:$0xff]  }
 0x350   :  { %2711 = vmatprep.subr.bf16.mxu1 %v4801_v2  ;;  %2793 = vmatprep.subr.bf16.mxu0 %v4804_v3  ;;  %v4873_v2 = vld [vmem:[#allocation7 + $0xa4] ss:$16 sps:$4 sm:$0xff]   ;;  %v4876_v3 = vld [vmem:[#allocation7 + $0xac] ss:$16 sps:$4 sm:$0xff]  }
 0x353   :  { %2712 = vmatpush1.bf16.msra.mxu1 %v4799_v4  ;;  %2794 = vmatpush1.bf16.msra.mxu0 %v4802_v5  ;;  %v4871_v4 = vld [vmem:[#allocation7 + $0xa0] ss:$16 sps:$4 sm:$0xff]   ;;  %v4874_v5 = vld [vmem:[#allocation7 + $0xa8] ss:$16 sps:$4 sm:$0xff]  }
 0x354   :  { %2713 = vmatprep.subr.bf16.mxu1 %v4807_v6  ;;  %2795 = vmatprep.subr.bf16.mxu0 %v4810_v7  ;;  %v4879_v6 = vld [vmem:[#allocation7 + $0xc4] ss:$16 sps:$4 sm:$0xff]   ;;  %v4882_v7 = vld [vmem:[#allocation7 + $0xcc] ss:$16 sps:$4 sm:$0xff]  }
 0x357   :  { %2714 = vmatpush1.bf16.msra.mxu1 %v4805_v8  ;;  %2796 = vmatpush1.bf16.msra.mxu0 %v4808_v9  ;;  %v4877_v8 = vld [vmem:[#allocation7 + $0xc0] ss:$16 sps:$4 sm:$0xff]   ;;  %v4880_v9 = vld [vmem:[#allocation7 + $0xc8] ss:$16 sps:$4 sm:$0xff]  }
 0x358   :  { %2715 = vmatprep.subr.bf16.mxu1 %v4813_v14  ;;  %2797 = vmatprep.subr.bf16.mxu0 %v4816_v24  ;;  %v4885_v14 = vld [vmem:[#allocation7 + $0xe4] ss:$16 sps:$4 sm:$0xff]   ;;  %v4888_v24 = vld [vmem:[#allocation7 + $0xec] ss:$16 sps:$4 sm:$0xff]  }
 0x35b   :  { %2716 = vmatpush1.bf16.msra.mxu1 %v4811_v25  ;;  %2798 = vmatpush1.bf16.msra.mxu0 %v4814_v20  ;;  %v4883_v25 = vld [vmem:[#allocation7 + $0xe0] ss:$16 sps:$4 sm:$0xff]   ;;  %v4886_v20 = vld [vmem:[#allocation7 + $0xe8] ss:$16 sps:$4 sm:$0xff]  }
 0x35c   :  { %2717 = vmatprep.subr.bf16.mxu1 %v4819_v28  ;;  %2799 = vmatprep.subr.bf16.mxu0 %v4822_v32  ;;  %v4891_v28 = vld [vmem:[#allocation7 + $0x104] ss:$16 sps:$4 sm:$0xff]   ;;  %v4894_v32 = vld [vmem:[#allocation7 + $0x10c] ss:$16 sps:$4 sm:$0xff]  }
 0x35f   :  { %2718 = vmatpush1.bf16.msra.mxu1 %v4817_v39  ;;  %2800 = vmatpush1.bf16.msra.mxu0 %v4820_v18  ;;  %v4889_v39 = vld [vmem:[#allocation7 + $0x100] ss:$16 sps:$4 sm:$0xff]   ;;  %v4892_v18 = vld [vmem:[#allocation7 + $0x108] ss:$16 sps:$4 sm:$0xff]  }
 0x360   :  { %2719 = vmatprep.subr.bf16.mxu1 %v4825_v40  ;;  %2801 = vmatprep.subr.bf16.mxu0 %v4828_v10  ;;  %v4897_v40 = vld [vmem:[#allocation7 + $0x124] ss:$16 sps:$4 sm:$0xff]   ;;  %v4900_v10 = vld [vmem:[#allocation7 + $0x12c] ss:$16 sps:$4 sm:$0xff]  }
 0x363   :  { %2720 = vmatpush1.bf16.msra.mxu1 %v4823_v16  ;;  %2802 = vmatpush1.bf16.msra.mxu0 %v4826_v42  ;;  %v4895_v16 = vld [vmem:[#allocation7 + $0x120] ss:$16 sps:$4 sm:$0xff]   ;;  %v4898_v42 = vld [vmem:[#allocation7 + $0x128] ss:$16 sps:$4 sm:$0xff]  }
 0x364   :  { %2721 = vmatprep.subr.bf16.mxu1 %v4831_v30  ;;  %2803 = vmatprep.subr.bf16.mxu0 %v4834_v46  ;;  %v4903_v30 = vld [vmem:[#allocation7 + $0x144] ss:$16 sps:$4 sm:$0xff]   ;;  %v4906_v46 = vld [vmem:[#allocation7 + $0x14c] ss:$16 sps:$4 sm:$0xff]  }
 0x365   :  { %v1847_v33 = vpop.f32.mrb[8].mxu1 }
 0x366   :  { %v1848_v51 = vadd.f32 %v1847_v33, %v1443_v47  ;;  %v1849_v52 = vpop.f32.mrb[9].mxu1  ;;  %v4901_v47 = vld [vmem:[#allocation7 + $0x140] ss:$16 sps:$4 sm:$0xff]   ;;  %v4915_v33 = vld [vmem:[#allocation7 + $0x184] ss:$16 sps:$4 sm:$0xff]  }
 0x367   :  { %v1850_v31 = vadd.f32 %v1849_v52, %v1447_v48  ;;  %v1851_v53 = vpop.f32.mrb[10].mxu1  ;;  %2722 = vmatpush1.bf16.msra.mxu1 %v4829_v49  ;;  %2804 = vmatpush1.bf16.msra.mxu0 %v4832_v50  ;;  %v4904_v48 = vld [vmem:[#allocation7 + $0x148] ss:$16 sps:$4 sm:$0xff]   ;;  %v4909_v49 = vld [vmem:[#allocation7 + $0x164] ss:$16 sps:$4 sm:$0xff]  }
 0x368   :  { %v1856_v58 = vmax.f32 %v1848_v51, 0.0  ;;  %v1852_v56 = vpop.f32.mrb[11].mxu1  ;;  %2723 = vmatprep.subr.bf16.mxu1 %v4837_v12  ;;  %2805 = vmatprep.subr.bf16.mxu0 %v4840_v17  ;;  %v4912_v50 = vld [vmem:[#allocation7 + $0x16c] ss:$16 sps:$4 sm:$0xff]   ;;  %v4907_v12 = vld [vmem:[#allocation7 + $0x160] ss:$16 sps:$4 sm:$0xff]  }
 0x369   :  { %v1857_v59 = vmax.f32 %v1850_v31, 0.0  ;;  %v4910_v17 = vld [vmem:[#allocation7 + $0x168] ss:$16 sps:$4 sm:$0xff]   ;;  %v4918_v51 = vld [vmem:[#allocation7 + $0x18c] ss:$16 sps:$4 sm:$0xff]  }
 0x36a   :  { %v1860_v19 = vpack.c.bf16 %v1856_v58, %v1856_v58  ;;  %v4913_v52 = vld [vmem:[#allocation7 + $0x180] ss:$16 sps:$4 sm:$0xff]   ;;  %v4916_v31 = vld [vmem:[#allocation7 + $0x188] ss:$16 sps:$4 sm:$0xff]   ;;  %v4921_v53 = vld [vmem:[#allocation7 + $0x1a4] ss:$16 sps:$4 sm:$0xff]  }
 0x36b   :  { %v1861_v60 = vpack.c.bf16 %v1857_v59, %v1857_v59  ;;  %2724 = vmatpush1.bf16.msra.mxu1 %v4835_v54  ;;  %2806 = vmatpush1.bf16.msra.mxu0 %v4838_v55  ;;  %v4924_v54 = vld [vmem:[#allocation7 + $0x1ac] ss:$16 sps:$4 sm:$0xff]   ;;  %v4919_v55 = vld [vmem:[#allocation7 + $0x1a0] ss:$16 sps:$4 sm:$0xff]   ;;  %v4922_v58 = vld [vmem:[#allocation7 + $0x1a8] ss:$16 sps:$4 sm:$0xff]  }
 0x36c   :  { %3614 = vmatprep.subr.bf16.mxu1 %v4843_v13  ;;  %3696 = vmatprep.subr.bf16.mxu0 %v4846_v11  ;;  %v4925_v56 = vld [vmem:[#allocation7 + $0x1c0] ss:$16 sps:$4 sm:$0xff]   ;;  %v4927_v13 = vld [vmem:[#allocation7 + $0x1c4] ss:$16 sps:$4 sm:$0xff]   ;;  %v4928_v11 = vld [vmem:[#allocation7 + $0x1c8] ss:$16 sps:$4 sm:$0xff]  }
 0x36d   :  { %2725 = vmatprep.mubr.bf16.mxu1 %v1861_v60  ;;  %2807 = vmatprep.mubr.bf16.mxu0 %v1861_v60  ;;  %v4930_v59 = vld [vmem:[#allocation7 + $0x1cc] ss:$16 sps:$4 sm:$0xff]   ;;  %v4933_v60 = vld [vmem:[#allocation7 + $0x1e4] ss:$16 sps:$4 sm:$0xff]  }
 0x36e   :  { %2726 = vmatmul.mubr.bf16.vlgmr.msra.gmra.mrb[12].mxu1 %v1860_v19  ;;  %2808 = vmatmul.mubr.bf16.vlgmr.msra.gmra.mrb[4].mxu0 %v1860_v19  ;;  %v4934_v19 = vld [vmem:[#allocation7 + $0x1e8] ss:$16 sps:$4 sm:$0xff]  }
 0x36f   :  { %3615 = vmatpush1.bf16.msra.mxu1 %v4841_v26  ;;  %3697 = vmatpush1.bf16.msra.mxu0 %v4844_v62  ;;  %v4936_v26 = vld [vmem:[#allocation7 + $0x1ec] ss:$16 sps:$4 sm:$0xff]   ;;  %v4931_v62 = vld [vmem:[#allocation7 + $0x1e0] ss:$16 sps:$4 sm:$0xff]  }
 0x370   :  { %3616 = vmatprep.subr.bf16.mxu1 %v4849_v22  ;;  %3698 = vmatprep.subr.bf16.mxu0 %v4852_v27  ;;  %v4939_v22 = vld [vmem:[#allocation7 + $0x204] ss:$16 sps:$4 sm:$0xff]   ;;  %v4942_v27 = vld [vmem:[#allocation7 + $0x20c] ss:$16 sps:$4 sm:$0xff]  }
 0x373   :  { %3617 = vmatpush1.bf16.msra.mxu1 %v4847_v15  ;;  %3699 = vmatpush1.bf16.msra.mxu0 %v4850_v35  ;;  %v5575_v15 = vld [vmem:[%s5612_s5] sm:$0xf] }
 0x374   :  { %3618 = vmatprep.subr.bf16.mxu1 %v4855_v57  ;;  %3700 = vmatprep.subr.bf16.mxu0 %v4858_v63  ;;  %v1995_v35 = vrot.slane %v5575_v15, %v5548_v36  ;;  %v1999_v57 = vrot.slane %v5575_v15, %v5556_v37  ;;  %v2007_v63 = vrot.slane %v5575_v15, %v5566_v45 }
 0x377   :  { %3619 = vmatpush1.bf16.msra.mxu1 %v4853_v29  ;;  %3701 = vmatpush1.bf16.msra.mxu0 %v4856_v0 }
 0x378   :  { %3620 = vmatprep.subr.bf16.mxu1 %v4861_v21  ;;  %3702 = vmatprep.subr.bf16.mxu0 %v4864_v43 }
 0x37b   :  { %3621 = vmatpush1.bf16.msra.mxu1 %v4859_v44  ;;  %3703 = vmatpush1.bf16.msra.mxu0 %v4862_v1 }
 0x37c   :  { %3622 = vmatprep.subr.bf16.mxu1 %v4867_v23  ;;  %3704 = vmatprep.subr.bf16.mxu0 %v4870_v61 }
 0x37f   :  { %3623 = vmatpush1.bf16.msra.mxu1 %v4865_v34  ;;  %3705 = vmatpush1.bf16.msra.mxu0 %v4868_v38 }
 0x380   :  { %3624 = vmatprep.subr.bf16.mxu1 %v4873_v2  ;;  %3706 = vmatprep.subr.bf16.mxu0 %v4876_v3 }
 0x383   :  { %3625 = vmatpush1.bf16.msra.mxu1 %v4871_v4  ;;  %3707 = vmatpush1.bf16.msra.mxu0 %v4874_v5 }
 0x384   :  { %3626 = vmatprep.subr.bf16.mxu1 %v4879_v6  ;;  %3708 = vmatprep.subr.bf16.mxu0 %v4882_v7  ;;  %v4937_v7 = vld [vmem:[#allocation7 + $0x200] ss:$16 sps:$4 sm:$0xff]  }
 0x387   :  { %3627 = vmatpush1.bf16.msra.mxu1 %v4877_v8  ;;  %3709 = vmatpush1.bf16.msra.mxu0 %v4880_v9  ;;  %v4940_v8 = vld [vmem:[#allocation7 + $0x208] ss:$16 sps:$4 sm:$0xff]  }
 0x388   :  { %3628 = vmatprep.subr.bf16.mxu1 %v4885_v14  ;;  %3710 = vmatprep.subr.bf16.mxu0 %v4888_v24  ;;  %v4945_v14 = vld [vmem:[#allocation7 + $0x224] ss:$16 sps:$4 sm:$0xff]   ;;  %v4948_v24 = vld [vmem:[#allocation7 + $0x22c] ss:$16 sps:$4 sm:$0xff]  }
 0x38b   :  { %3629 = vmatpush1.bf16.msra.mxu1 %v4883_v25  ;;  %3711 = vmatpush1.bf16.msra.mxu0 %v4886_v20  ;;  %v4943_v20 = vld [vmem:[#allocation7 + $0x220] ss:$16 sps:$4 sm:$0xff]  }
 0x38c   :  { %3630 = vmatprep.subr.bf16.mxu1 %v4891_v28  ;;  %3712 = vmatprep.subr.bf16.mxu0 %v4894_v32  ;;  %v4946_v28 = vld [vmem:[#allocation7 + $0x228] ss:$16 sps:$4 sm:$0xff]   ;;  %v4951_v32 = vld [vmem:[#allocation7 + $0x244] ss:$16 sps:$4 sm:$0xff]  }
 0x38f   :  { %3631 = vmatpush1.bf16.msra.mxu1 %v4889_v39  ;;  %3713 = vmatpush1.bf16.msra.mxu0 %v4892_v18  ;;  %v4954_v39 = vld [vmem:[#allocation7 + $0x24c] ss:$16 sps:$4 sm:$0xff]   ;;  %v4949_v18 = vld [vmem:[#allocation7 + $0x240] ss:$16 sps:$4 sm:$0xff]  }
 0x390   :  { %3632 = vmatprep.subr.bf16.mxu1 %v4897_v40  ;;  %3714 = vmatprep.subr.bf16.mxu0 %v4900_v10  ;;  %v4952_v40 = vld [vmem:[#allocation7 + $0x248] ss:$16 sps:$4 sm:$0xff]   ;;  %v4957_v10 = vld [vmem:[#allocation7 + $0x264] ss:$16 sps:$4 sm:$0xff]  }
 0x393   :  { %3633 = vmatpush1.bf16.msra.mxu1 %v4895_v16  ;;  %3715 = vmatpush1.bf16.msra.mxu0 %v4898_v42  ;;  %v4960_v16 = vld [vmem:[#allocation7 + $0x26c] ss:$16 sps:$4 sm:$0xff]   ;;  %v4955_v42 = vld [vmem:[#allocation7 + $0x260] ss:$16 sps:$4 sm:$0xff]  }
 0x394   :  { %3634 = vmatprep.subr.bf16.mxu1 %v4903_v30  ;;  %3716 = vmatprep.subr.bf16.mxu0 %v4906_v46  ;;  %v4958_v30 = vld [vmem:[#allocation7 + $0x268] ss:$16 sps:$4 sm:$0xff]   ;;  %v4963_v46 = vld [vmem:[#allocation7 + $0x284] ss:$16 sps:$4 sm:$0xff]  }
 0x397   :  { %3635 = vmatpush1.bf16.msra.mxu1 %v4901_v47  ;;  %3717 = vmatpush1.bf16.msra.mxu0 %v4904_v48  ;;  %v4966_v47 = vld [vmem:[#allocation7 + $0x28c] ss:$16 sps:$4 sm:$0xff]   ;;  %v4961_v48 = vld [vmem:[#allocation7 + $0x280] ss:$16 sps:$4 sm:$0xff]  }
 0x398   :  { %3636 = vmatprep.subr.bf16.mxu1 %v4909_v49  ;;  %3718 = vmatprep.subr.bf16.mxu0 %v4912_v50  ;;  %v4964_v49 = vld [vmem:[#allocation7 + $0x288] ss:$16 sps:$4 sm:$0xff]   ;;  %v4969_v50 = vld [vmem:[#allocation7 + $0x2a4] ss:$16 sps:$4 sm:$0xff]  }
 0x39b   :  { %3637 = vmatpush1.bf16.msra.mxu1 %v4907_v12  ;;  %3719 = vmatpush1.bf16.msra.mxu0 %v4910_v17  ;;  %v4972_v12 = vld [vmem:[#allocation7 + $0x2ac] ss:$16 sps:$4 sm:$0xff]   ;;  %v4967_v17 = vld [vmem:[#allocation7 + $0x2a0] ss:$16 sps:$4 sm:$0xff]  }
 0x39c   :  { %3638 = vmatprep.subr.bf16.mxu1 %v4915_v33  ;;  %3720 = vmatprep.subr.bf16.mxu0 %v4918_v51  ;;  %v4970_v33 = vld [vmem:[#allocation7 + $0x2a8] ss:$16 sps:$4 sm:$0xff]   ;;  %v4975_v51 = vld [vmem:[#allocation7 + $0x2c4] ss:$16 sps:$4 sm:$0xff]  }
 0x39f   :  { %3639 = vmatpush1.bf16.msra.mxu1 %v4913_v52  ;;  %3721 = vmatpush1.bf16.msra.mxu0 %v4916_v31  ;;  %v4978_v52 = vld [vmem:[#allocation7 + $0x2cc] ss:$16 sps:$4 sm:$0xff]   ;;  %v4973_v31 = vld [vmem:[#allocation7 + $0x2c0] ss:$16 sps:$4 sm:$0xff]  }
 0x3a0   :  { %3640 = vmatprep.subr.bf16.mxu1 %v4921_v53  ;;  %3722 = vmatprep.subr.bf16.mxu0 %v4924_v54  ;;  %v4976_v53 = vld [vmem:[#allocation7 + $0x2c8] ss:$16 sps:$4 sm:$0xff]   ;;  %v4981_v54 = vld [vmem:[#allocation7 + $0x2e4] ss:$16 sps:$4 sm:$0xff]  }
 0x3a3   :  { %3641 = vmatpush1.bf16.msra.mxu1 %v4919_v55  ;;  %3723 = vmatpush1.bf16.msra.mxu0 %v4922_v58  ;;  %v4984_v55 = vld [vmem:[#allocation7 + $0x2ec] ss:$16 sps:$4 sm:$0xff]   ;;  %v4979_v58 = vld [vmem:[#allocation7 + $0x2e0] ss:$16 sps:$4 sm:$0xff]  }
 0x3a4   :  { %3642 = vmatprep.subr.bf16.mxu1 %v4927_v13  ;;  %3724 = vmatprep.subr.bf16.mxu0 %v4930_v59  ;;  %v4987_v13 = vld [vmem:[#allocation7 + $0x304] ss:$16 sps:$4 sm:$0xff]   ;;  %v4985_v59 = vld [vmem:[#allocation7 + $0x300] ss:$16 sps:$4 sm:$0xff]  }
 0x3a7   :  { %3643 = vmatpush1.bf16.msra.mxu1 %v4925_v56  ;;  %3725 = vmatpush1.bf16.msra.mxu0 %v4928_v11  ;;  %v4982_v56 = vld [vmem:[#allocation7 + $0x2e8] ss:$16 sps:$4 sm:$0xff]   ;;  %v4990_v11 = vld [vmem:[#allocation7 + $0x30c] ss:$16 sps:$4 sm:$0xff]  }
 0x3a8   :  { %3644 = vmatprep.subr.bf16.mxu1 %v4933_v60  ;;  %3726 = vmatprep.subr.bf16.mxu0 %v4936_v26  ;;  %v4988_v60 = vld [vmem:[#allocation7 + $0x308] ss:$16 sps:$4 sm:$0xff]   ;;  %v4993_v26 = vld [vmem:[#allocation7 + $0x324] ss:$16 sps:$4 sm:$0xff]  }
 0x3ab   :  { %3645 = vmatpush1.bf16.msra.mxu1 %v4931_v62  ;;  %3727 = vmatpush1.bf16.msra.mxu0 %v4934_v19  ;;  %v4996_v62 = vld [vmem:[#allocation7 + $0x32c] ss:$16 sps:$4 sm:$0xff]   ;;  %v4991_v19 = vld [vmem:[#allocation7 + $0x320] ss:$16 sps:$4 sm:$0xff]  }
 0x3ac   :  { %3655 = vmatprep.subr.bf16.mxu1 %v4939_v22  ;;  %3737 = vmatprep.subr.bf16.mxu0 %v4942_v27  ;;  %v4994_v22 = vld [vmem:[#allocation7 + $0x328] ss:$16 sps:$4 sm:$0xff]   ;;  %v4999_v27 = vld [vmem:[#allocation7 + $0x344] ss:$16 sps:$4 sm:$0xff]  }
 0x441   :  { %v2727_v29 = vpop.f32.mrb[12].mxu1  ;;  %v5583_v0 = vpop.f32.mrb[4].mxu0 }
 0x442   :  { %v4303_v21 = vadd.f32 %v2727_v29, %v1995_v35  ;;  %v2729_v43 = vpop.f32.mrb[13].mxu1  ;;  %v2811_v44 = vpop.f32.mrb[5].mxu0  ;;  %v5002_v35 = vld [vmem:[#allocation7 + $0x34c] ss:$16 sps:$4 sm:$0xff]   ;;  %v5005_v29 = vld [vmem:[#allocation7 + $0x364] ss:$16 sps:$4 sm:$0xff]  }
 0x443   :  { %v4304_v1 = vadd.f32 %v2729_v43, %v1999_v57  ;;  %v4306_v23 = vadd.f32 %v2811_v44, %v2007_v63  ;;  %v2731_v61 = vpop.f32.mrb[14].mxu1  ;;  %v2813_v34 = vpop.f32.mrb[6].mxu0  ;;  %v4997_v57 = vld [vmem:[#allocation7 + $0x340] ss:$16 sps:$4 sm:$0xff]   ;;  %v5000_v63 = vld [vmem:[#allocation7 + $0x348] ss:$16 sps:$4 sm:$0xff]  }
 0x444   :  { %v2816_v38 = vmax.f32 %v4303_v21, 0.0  ;;  %v2732_v2 = vpop.f32.mrb[15].mxu1  ;;  %v2814_v3 = vpop.f32.mrb[7].mxu0  ;;  %v5008_v21 = vld [vmem:[#allocation7 + $0x36c] ss:$16 sps:$4 sm:$0xff]  }
 0x445   :  { %v2817_v4 = vmax.f32 %v4304_v1, 0.0  ;;  %v2819_v5 = vmax.f32 %v4306_v23, 0.0  ;;  %v5003_v43 = vld [vmem:[#allocation7 + $0x360] ss:$16 sps:$4 sm:$0xff]   ;;  %v5006_v44 = vld [vmem:[#allocation7 + $0x368] ss:$16 sps:$4 sm:$0xff]  }
 0x446   :  { %v2820_v9 = vpack.c.bf16 %v2816_v38, %v2816_v38  ;;  %v5011_v1 = vld [vmem:[#allocation7 + $0x384] ss:$16 sps:$4 sm:$0xff]   ;;  %v5014_v23 = vld [vmem:[#allocation7 + $0x38c] ss:$16 sps:$4 sm:$0xff]   ;;  %v5009_v61 = vld [vmem:[#allocation7 + $0x380] ss:$16 sps:$4 sm:$0xff]  }
 0x447   :  { %v2821_v6 = vpack.c.bf16 %v2817_v4, %v2817_v4  ;;  %v2823_v25 = vpack.c.bf16 %v2819_v5, %v2819_v5  ;;  %v5012_v34 = vld [vmem:[#allocation7 + $0x388] ss:$16 sps:$4 sm:$0xff]   ;;  %v5017_v38 = vld [vmem:[#allocation7 + $0x3a4] ss:$16 sps:$4 sm:$0xff]   ;;  %v5020_v2 = vld [vmem:[#allocation7 + $0x3ac] ss:$16 sps:$4 sm:$0xff]   ;;  %v2003_v5 = vrot.slane %v5575_v15, %v5563_v41 }
 0x448   :  { %v5015_v3 = vld [vmem:[#allocation7 + $0x3a0] ss:$16 sps:$4 sm:$0xff]   ;;  %v5018_v4 = vld [vmem:[#allocation7 + $0x3a8] ss:$16 sps:$4 sm:$0xff]  }
 0x449   :  { %3646 = vmatprep.mubr.bf16.mxu1 %v2821_v6  ;;  %3728 = vmatprep.mubr.bf16.mxu0 %v2821_v6  ;;  %v5023_v6 = vld [vmem:[#allocation7 + $0x3c4] ss:$16 sps:$4 sm:$0xff]  }
 0x44a   :  { %3647 = vmatmul.mubr.bf16.vlgmr.msra.gmra.mrb[16].mxu1 %v2820_v9  ;;  %3729 = vmatmul.mubr.bf16.vlgmr.msra.gmra.mrb[8].mxu0 %v2820_v9  ;;  %v5024_v9 = vld [vmem:[#allocation7 + $0x3c8] ss:$16 sps:$4 sm:$0xff]  }
 0x44b   :  { %3656 = vmatpush1.bf16.msra.mxu1 %v4937_v7  ;;  %3738 = vmatpush1.bf16.msra.mxu0 %v4940_v8  ;;  %v5026_v7 = vld [vmem:[#allocation7 + $0x3cc] ss:$16 sps:$4 sm:$0xff]   ;;  %v5021_v8 = vld [vmem:[#allocation7 + $0x3c0] ss:$16 sps:$4 sm:$0xff]  }
 0x44c   :  { %3687 = vmatprep.mubr.bf16.mxu1 %v2823_v25  ;;  %3769 = vmatprep.mubr.bf16.mxu0 %v2823_v25  ;;  %v5032_v25 = vld [vmem:[#allocation7 + $0x3ec] ss:$16 sps:$4 sm:$0xff]  }
 0x44d   :  { %3657 = vmatprep.subr.bf16.mxu1 %v4945_v14  ;;  %3739 = vmatprep.subr.bf16.mxu0 %v4948_v24  ;;  %v4305_v14 = vadd.f32 %v5583_v0, %v2003_v5  ;;  %v5029_v24 = vld [vmem:[#allocation7 + $0x3e4] ss:$16 sps:$4 sm:$0xff]   ;;  %v2952_v0 = vld [vmem:[%s5614_s7] sm:$0xf] }
 0x44f   :  { %3658 = vmatpush1.bf16.msra.mxu1 %v4943_v20  ;;  %3740 = vmatpush1.bf16.msra.mxu0 %v4946_v28  ;;  %v5027_v20 = vld [vmem:[#allocation7 + $0x3e0] ss:$16 sps:$4 sm:$0xff]   ;;  %v5030_v28 = vld [vmem:[#allocation7 + $0x3e8] ss:$16 sps:$4 sm:$0xff]  }
 0x450   :  { %3659 = vmatprep.subr.bf16.mxu1 %v4951_v32  ;;  %3741 = vmatprep.subr.bf16.mxu0 %v4954_v39  ;;  %v2818_v32 = vmax.f32 %v4305_v14, 0.0  ;;  %v2957_v39 = vrot.slane %v2952_v0, %v5548_v36 }
 0x452   :  { %v2822_v15 = vpack.c.bf16 %v2818_v32, %v2818_v32 }
 0x453   :  { %3660 = vmatpush1.bf16.msra.mxu1 %v4949_v18  ;;  %3742 = vmatpush1.bf16.msra.mxu0 %v4952_v40  ;;  %v2965_v18 = vrot.slane %v2952_v0, %v5563_v41  ;;  %v2961_v40 = vrot.slane %v2952_v0, %v5556_v37 }
 0x454   :  { %3661 = vmatprep.subr.bf16.mxu1 %v4957_v10  ;;  %3743 = vmatprep.subr.bf16.mxu0 %v4960_v16  ;;  %v2969_v10 = vrot.slane %v2952_v0, %v5566_v45 }
 0x457   :  { %3662 = vmatpush1.bf16.msra.mxu1 %v4955_v42  ;;  %3744 = vmatpush1.bf16.msra.mxu0 %v4958_v30 }
 0x458   :  { %3663 = vmatprep.subr.bf16.mxu1 %v4963_v46  ;;  %3745 = vmatprep.subr.bf16.mxu0 %v4966_v47 }
 0x45b   :  { %3664 = vmatpush1.bf16.msra.mxu1 %v4961_v48  ;;  %3746 = vmatpush1.bf16.msra.mxu0 %v4964_v49 }
 0x45c   :  { %3665 = vmatprep.subr.bf16.mxu1 %v4969_v50  ;;  %3747 = vmatprep.subr.bf16.mxu0 %v4972_v12 }
 0x45f   :  { %3666 = vmatpush1.bf16.msra.mxu1 %v4967_v17  ;;  %3748 = vmatpush1.bf16.msra.mxu0 %v4970_v33 }
 0x460   :  { %3667 = vmatprep.subr.bf16.mxu1 %v4975_v51  ;;  %3749 = vmatprep.subr.bf16.mxu0 %v4978_v52 }
 0x463   :  { %3668 = vmatpush1.bf16.msra.mxu1 %v4973_v31  ;;  %3750 = vmatpush1.bf16.msra.mxu0 %v4976_v53 }
 0x464   :  { %3669 = vmatprep.subr.bf16.mxu1 %v4981_v54  ;;  %3751 = vmatprep.subr.bf16.mxu0 %v4984_v55 }
 0x467   :  { %3670 = vmatpush1.bf16.msra.mxu1 %v4979_v58  ;;  %3752 = vmatpush1.bf16.msra.mxu0 %v4982_v56 }
 0x468   :  { %3671 = vmatprep.subr.bf16.mxu1 %v4987_v13  ;;  %3753 = vmatprep.subr.bf16.mxu0 %v4990_v11 }
 0x46b   :  { %3672 = vmatpush1.bf16.msra.mxu1 %v4985_v59  ;;  %3754 = vmatpush1.bf16.msra.mxu0 %v4988_v60 }
 0x46c   :  { %3673 = vmatprep.subr.bf16.mxu1 %v4993_v26  ;;  %3755 = vmatprep.subr.bf16.mxu0 %v4996_v62 }
 0x46f   :  { %3674 = vmatpush1.bf16.msra.mxu1 %v4991_v19  ;;  %3756 = vmatpush1.bf16.msra.mxu0 %v4994_v22 }
 0x470   :  { %3675 = vmatprep.subr.bf16.mxu1 %v4999_v27  ;;  %3757 = vmatprep.subr.bf16.mxu0 %v5002_v35 }
 0x473   :  { %3676 = vmatpush1.bf16.msra.mxu1 %v4997_v57  ;;  %3758 = vmatpush1.bf16.msra.mxu0 %v5000_v63 }
 0x474   :  { %3677 = vmatprep.subr.bf16.mxu1 %v5005_v29  ;;  %3759 = vmatprep.subr.bf16.mxu0 %v5008_v21 }
 0x477   :  { %3678 = vmatpush1.bf16.msra.mxu1 %v5003_v43  ;;  %3760 = vmatpush1.bf16.msra.mxu0 %v5006_v44 }
 0x478   :  { %3679 = vmatprep.subr.bf16.mxu1 %v5011_v1  ;;  %3761 = vmatprep.subr.bf16.mxu0 %v5014_v23 }
 0x47b   :  { %3680 = vmatpush1.bf16.msra.mxu1 %v5009_v61  ;;  %3762 = vmatpush1.bf16.msra.mxu0 %v5012_v34 }
 0x47c   :  { %3681 = vmatprep.subr.bf16.mxu1 %v5017_v38  ;;  %3763 = vmatprep.subr.bf16.mxu0 %v5020_v2 }
 0x47f   :  { %3682 = vmatpush1.bf16.msra.mxu1 %v5015_v3  ;;  %3764 = vmatpush1.bf16.msra.mxu0 %v5018_v4 }
 0x480   :  { %3683 = vmatprep.subr.bf16.mxu1 %v5023_v6  ;;  %3765 = vmatprep.subr.bf16.mxu0 %v5026_v7 }
 0x483   :  { %3684 = vmatpush1.bf16.msra.mxu1 %v5021_v8  ;;  %3766 = vmatpush1.bf16.msra.mxu0 %v5024_v9 }
 0x484   :  { %3685 = vmatprep.subr.bf16.mxu1 %v5029_v24  ;;  %3767 = vmatprep.subr.bf16.mxu0 %v5032_v25 }
 0x487   :  { %3686 = vmatpush1.bf16.msra.mxu1 %v5027_v20  ;;  %3768 = vmatpush1.bf16.msra.mxu0 %v5030_v28 }
 0x48a   :  { %3688 = vmatmul.mubr.bf16.vlgmr.msra.gmra.mrb[16].mxu1 %v2822_v15  ;;  %3770 = vmatmul.mubr.bf16.vlgmr.msra.gmra.mrb[8].mxu0 %v2822_v15 }
 0x55d   :  { %v3689_v16 = vpop.f32.mrb[16].mxu1  ;;  %v3771_v42 = vpop.f32.mrb[8].mxu0 }
 0x55e   :  { %v4307_v30 = vadd.f32 %v3689_v16, %v2957_v39  ;;  %v4309_v46 = vadd.f32 %v3771_v42, %v2965_v18  ;;  %v3691_v47 = vpop.f32.mrb[17].mxu1  ;;  %v3773_v48 = vpop.f32.mrb[9].mxu0 }
 0x55f   :  { %v4308_v49 = vadd.f32 %v3691_v47, %v2961_v40  ;;  %v4310_v50 = vadd.f32 %v3773_v48, %v2969_v10  ;;  %v3693_v12 = vpop.f32.mrb[18].mxu1  ;;  %v3775_v17 = vpop.f32.mrb[10].mxu0 }
 0x560   :  { %3778 = vst [vmem:[%s5615_s8] sm:$0xff] %v4307_v30  ;;  %3780 = vst [vmem:[%s5615_s8 + $0x10] sm:$0xff] %v4309_v46  ;;  %v3694_v36 = vpop.f32.mrb[19].mxu1  ;;  %v3776_v37 = vpop.f32.mrb[11].mxu0 }
 0x561   :  { %3779 = vst [vmem:[%s5615_s8 + $0x8] sm:$0xff] %v4308_v49  ;;  %3781 = vst [vmem:[%s5615_s8 + $0x18] sm:$0xff] %v4310_v50 }
 0x562   :  { %3786 = vsyncpa [#allocation3], 1 }
 0x563   :  { %3787 = vsyncpa [#allocation5], 1 }
 0x564   :  { %3788 = vsyncpa [#allocation8], 1 }

</bundles_post_ra>
